<compile_context>
chip_gen: v7x
topology: tpu7x:2x2x1
jax: 0.10.0
libtpu: 0.0.40
codegen_flags: <defaults>
</compile_context>

<pallas_src>
import jax
import jax.numpy as jnp
import numpy as np
from jax import lax
from jax.experimental import pallas as pl
from jax.experimental.pallas import tpu as pltpu


def _tensorcores_per_chip():
    """v7x has 2 TensorCores per chip; v5e/v6e have 1. Best-effort detection."""
    try:
        kind = jax.devices()[0].device_kind.lower()
    except Exception:
        return 1
    return 2 if ("v7" in kind or "tpu7" in kind) else 1


def _pick_batch_tile(B, cap, n_cores):
    """Largest batch tile that fits the VMEM budget; on multi-TC chips prefer a
    step count that is a multiple of the core count so both cores stay busy."""
    cap = max(1, min(cap, B))
    divs = [d for d in range(1, cap + 1) if B % d == 0]
    if n_cores > 1:
        good = [d for d in divs if (B // d) >= n_cores and (B // d) % n_cores == 0]
        if good:
            return max(good)
    return max(divs)  # single TC: fewest grid steps that fit (min per-step overhead)


def _make_kernel(HWp, N, offs):
    """Kernel closure. HWp: padded per-image lane stride, N = Bt*HWp, offs: the 9
    flat tap offsets (dy-1)*W + (dx-1) in tap-major (dy, dx) order."""
    Bt = N // HWp

    def kernel(x_ref, mask_ref, wf_ref, b1_ref, w2_ref, b2_ref, o_ref):
        # x_ref   : (Bt, C, HWp) f32   input images (NCHW, flattened + lane-padded)
        # mask_ref: (9, 1, N)    f32   {0,1} boundary masks per tap (periodic in HWp)
        # wf_ref  : (HID, 9C)    bf16  conv folded into Linear(C,128), tap-major cols
        # b1_ref  : (HID, 1)     f32
        # w2_ref  : (C, HID)     bf16
        # b2_ref  : (C, 1)       f32
        # o_ref   : (Bt, C, HWp) f32
        # Merge the batch tile into the lane (N) dimension: (Bt, C, HWp) -> (C, N).
        if Bt > 1:
            x = jnp.concatenate([x_ref[b] for b in range(Bt)], axis=1)   # (C, N) f32
        else:
            x = x_ref[0]

        # Build the 9 conv taps with lane rotations + boundary masks (zero padding).
        taps = []
        for t, off in enumerate(offs):
            xt = x if off == 0 else pltpu.roll(x, shift=(-off) % N, axis=1)
            xt = xt * mask_ref[t]                       # (C, N) * (1, N), f32
            taps.append(xt.astype(jnp.bfloat16))
        xs = jnp.concatenate(taps, axis=0)              # (9C, N) bf16

        # conv(3x3) + Linear(C, 128) fused: one MXU matmul, f32 accumulation.
        h = jnp.dot(wf_ref[...], xs, preferred_element_type=jnp.float32)  # (HID, N)
        h = jnp.maximum(h + b1_ref[...], 0.0)                             # f32 bias+ReLU

        # Linear(128, C): second MXU matmul, N = Bt*HWp lanes wide.
        upd = jnp.dot(w2_ref[...], h.astype(jnp.bfloat16),
                      preferred_element_type=jnp.float32) + b2_ref[...]   # (C, N) f32

        out = x + upd                                   # exact f32 residual
        for b in range(Bt):                             # lane-aligned (multiple of 128)
            o_ref[b] = out[:, b * HWp:(b + 1) * HWp]

    return kernel


def neural_ca_forward(x_nchw, w_conv, w1, b1, w2, b2):
    """x_nchw: (B, C, H, W) f32. Weights follow PyTorch conventions:
       w_conv: (Cout, Cin, 3, 3), w1: (128, C), b1: (128,), w2: (C, 128), b2: (C,)."""
    B, C, H, W = x_nchw.shape
    HID = w1.shape[0]
    HW = H * W
    HWp = ((HW + 127) // 128) * 128            # lane-dense per-image stride

    x = x_nchw.astype(jnp.float32).reshape(B, C, HW)
    if HWp != HW:
        x = jnp.pad(x, ((0, 0), (0, 0), (0, HWp - HW)))   # zero lane padding

    # Fold the 3x3 conv into the first Linear:
    #   W_fold[k, t*C + ci] = sum_co w1[k, co] * w_conv[co, ci, dy, dx],  t = dy*3 + dx
    wtaps = jnp.transpose(w_conv.astype(jnp.float32), (2, 3, 0, 1)).reshape(9, C, C)
    w_fold = jnp.einsum('hc,tcd->htd', w1.astype(jnp.float32), wtaps).reshape(HID, 9 * C)
    w_fold = w_fold.astype(jnp.bfloat16)       # bf16 MXU operand
    w2_c = w2.astype(jnp.bfloat16)
    b1_c = b1.reshape(HID, 1).astype(jnp.float32)
    b2_c = b2.reshape(C, 1).astype(jnp.float32)

    # Batch tile from a rough per-image VMEM working-set estimate (f32 in/out
    # double-buffered, bf16 stacked taps, f32 hidden acts, masks, temporaries).
    per_img_bytes = HWp * (46 * C + 6 * HID + 72)
    cap = max(1, (8 << 20) // max(per_img_bytes, 1))      # stay well under 16 MiB (v5e)
    Bt = _pick_batch_tile(B, cap, _tensorcores_per_chip())
    grid = (B // Bt,)
    N = Bt * HWp

    # Per-tap boundary masks (compile-time constants, passed as a small input).
    lane = np.arange(N)
    pos = lane % HWp
    row, col = pos // W, pos % W
    masks_np = np.zeros((9, 1, N), dtype=np.float32)
    offs = []
    t = 0
    for dy in range(3):
        for dx in range(3):
            ry, rx = dy - 1, dx - 1
            ok = (row + ry >= 0) & (row + ry < H) & (col + rx >= 0) & (col + rx < W)
            masks_np[t, 0] = ok.astype(np.float32)
            offs.append(ry * W + rx)
            t += 1
    masks = jnp.asarray(masks_np)

    kernel = _make_kernel(HWp, N, tuple(offs))

    flops = 2 * B * HWp * (HID * 9 * C + C * HID)
    bytes_accessed = int(x.size * 4 + B * C * HWp * 4 + masks.size * 4
                         + w_fold.size * 2 + w2_c.size * 2 + (HID + C) * 4)

    out_p = pl.pallas_call(
        kernel,
        out_shape=jax.ShapeDtypeStruct((B, C, HWp), jnp.float32),
        grid_spec=pltpu.PrefetchScalarGridSpec(
            num_scalar_prefetch=0,
            grid=grid,
            in_specs=[
                pl.BlockSpec((Bt, C, HWp), lambda i: (i, 0, 0)),   # x (batch-tiled)
                pl.BlockSpec((9, 1, N), lambda i: (0, 0, 0)),      # tap masks
                pl.BlockSpec((HID, 9 * C), lambda i: (0, 0)),      # folded conv+linear1
                pl.BlockSpec((HID, 1), lambda i: (0, 0)),          # b1
                pl.BlockSpec((C, HID), lambda i: (0, 0)),          # w2
                pl.BlockSpec((C, 1), lambda i: (0, 0)),            # b2
            ],
            out_specs=pl.BlockSpec((Bt, C, HWp), lambda i: (i, 0, 0)),
        ),
        compiler_params=pltpu.CompilerParams(
            dimension_semantics=("parallel",),       # batch axis -> megacore sharding
            vmem_limit_bytes=32 * 1024 * 1024,       # explicit, safe on v5e/v6e/v7x
        ),
        cost_estimate=pl.CostEstimate(flops=flops, transcendentals=0,
                                      bytes_accessed=bytes_accessed),
    )(x, masks, w_fold, b1_c, w2_c, b2_c)

    # Drop the per-image lane padding; channels-major == NCHW so no transpose.
    return out_p[:, :, :HW].reshape(B, C, H, W)


def _reference_forward(x_nchw, w_conv, w1, b1, w2, b2):
    """Pure-JAX f32 reference mirroring the PyTorch module."""
    B, C, H, W = x_nchw.shape
    y = lax.conv_general_dilated(
        x_nchw, w_conv, window_strides=(1, 1), padding="SAME",
        dimension_numbers=("NCHW", "OIHW", "NCHW"))
    flat = jnp.transpose(y.reshape(B, C, H * W), (0, 2, 1))      # (B, HW, C)
    h = jnp.maximum(flat @ w1.T + b1, 0.0)
    upd = h @ w2.T + b2
    return x_nchw + jnp.transpose(upd, (0, 2, 1)).reshape(B, C, H, W)


if __name__ == "__main__":
    # Small deterministic setup: B=2, C=16 (module default), H=W=16.
    B, C, H, W = 2, 16, 16, 16
    HID = 128

    key = jax.random.PRNGKey(0)
    kx, kc, k1, kb1, k2, kb2 = jax.random.split(key, 6)

    x = jax.random.normal(kx, (B, C, H, W), dtype=jnp.float32)
    w_conv = jax.random.normal(kc, (C, C, 3, 3), dtype=jnp.float32) * (1.0 / np.sqrt(C * 9))
    w1 = jax.random.normal(k1, (HID, C), dtype=jnp.float32) * (1.0 / np.sqrt(C))
    b1 = jax.random.normal(kb1, (HID,), dtype=jnp.float32) * 0.01
    w2 = jax.random.normal(k2, (C, HID), dtype=jnp.float32) * (1.0 / np.sqrt(HID))
    b2 = jax.random.normal(kb2, (C,), dtype=jnp.float32) * 0.01

    out = jax.block_until_ready(neural_ca_forward(x, w_conv, w1, b1, w2, b2))
    ref = jax.block_until_ready(_reference_forward(x, w_conv, w1, b1, w2, b2))

    # bf16 MXU operands (f32 accumulation) -> tolerance loosened vs. the f32 module.
    np.testing.assert_allclose(np.asarray(out), np.asarray(ref), rtol=2e-2, atol=2e-2)

    print("KERNEL_OK")
</pallas_src>

<mosaic_0001>
module attributes {stable_mosaic.version = 11 : i64} {
  func.func @kernel(%arg0: i32, %arg1: memref<2x16x256xf32, #tpu.memory_space<vmem>>, %arg2: memref<9x1x512xf32, #tpu.memory_space<vmem>>, %arg3: memref<128x144xbf16, #tpu.memory_space<vmem>>, %arg4: memref<128x1xf32, #tpu.memory_space<vmem>>, %arg5: memref<16x128xbf16, #tpu.memory_space<vmem>>, %arg6: memref<16x1xf32, #tpu.memory_space<vmem>>, %arg7: memref<2x16x256xf32, #tpu.memory_space<vmem>>) attributes {dimension_semantics = [#tpu.dimension_semantics<parallel>], iteration_bounds = array<i64: 1>, scalar_prefetch = 0 : i64, scratch_operands = 0 : i64, tpu.core_type = #tpu.core_type<tc>, window_params = [{transform_indices = @transform_0, window_bounds = array<i64: 2, 16, 256>}, {pipeline_mode = #tpu.pipeline_mode<synchronous>, transform_indices = @transform_1, window_bounds = array<i64: 9, 1, 512>}, {pipeline_mode = #tpu.pipeline_mode<synchronous>, transform_indices = @transform_2, window_bounds = array<i64: 128, 144>}, {pipeline_mode = #tpu.pipeline_mode<synchronous>, transform_indices = @transform_3, window_bounds = array<i64: 128, 1>}, {pipeline_mode = #tpu.pipeline_mode<synchronous>, transform_indices = @transform_4, window_bounds = array<i64: 16, 128>}, {pipeline_mode = #tpu.pipeline_mode<synchronous>, transform_indices = @transform_5, window_bounds = array<i64: 16, 1>}, {transform_indices = @transform_6, window_bounds = array<i64: 2, 16, 256>}]} {
    %c0 = arith.constant 0 : index
    %c0_0 = arith.constant 0 : index
    %c0_1 = arith.constant 0 : index
    %0 = vector.load %arg1[%c0, %c0_0, %c0_1] : memref<2x16x256xf32, #tpu.memory_space<vmem>>, vector<1x16x256xf32>
    %1 = vector.shape_cast %0 : vector<1x16x256xf32> to vector<16x256xf32>
    %c1 = arith.constant 1 : index
    %c0_2 = arith.constant 0 : index
    %c0_3 = arith.constant 0 : index
    %2 = vector.load %arg1[%c1, %c0_2, %c0_3] : memref<2x16x256xf32, #tpu.memory_space<vmem>>, vector<1x16x256xf32>
    %3 = vector.shape_cast %2 : vector<1x16x256xf32> to vector<16x256xf32>
    %4 = tpu.concatenate %1, %3 in 1 : vector<16x256xf32>, vector<16x256xf32> -> vector<16x512xf32>
    %c17_i32 = arith.constant 17 : i32
    %5 = tpu.dynamic_rotate %4 by %c17_i32 dim 1 : vector<16x512xf32>, i32 -> vector<16x512xf32>
    %c0_4 = arith.constant 0 : index
    %c0_5 = arith.constant 0 : index
    %c0_6 = arith.constant 0 : index
    %6 = vector.load %arg2[%c0_4, %c0_5, %c0_6] : memref<9x1x512xf32, #tpu.memory_space<vmem>>, vector<1x1x512xf32>
    %7 = vector.shape_cast %6 : vector<1x1x512xf32> to vector<1x512xf32>
    %8 = vector.broadcast %7 : vector<1x512xf32> to vector<16x512xf32>
    %9 = arith.mulf %5, %8 : vector<16x512xf32>
    %10 = arith.truncf %9 : vector<16x512xf32> to vector<16x512xbf16>
    %c16_i32 = arith.constant 16 : i32
    %11 = tpu.dynamic_rotate %4 by %c16_i32 dim 1 : vector<16x512xf32>, i32 -> vector<16x512xf32>
    %c1_7 = arith.constant 1 : index
    %c0_8 = arith.constant 0 : index
    %c0_9 = arith.constant 0 : index
    %12 = vector.load %arg2[%c1_7, %c0_8, %c0_9] : memref<9x1x512xf32, #tpu.memory_space<vmem>>, vector<1x1x512xf32>
    %13 = vector.shape_cast %12 : vector<1x1x512xf32> to vector<1x512xf32>
    %14 = vector.broadcast %13 : vector<1x512xf32> to vector<16x512xf32>
    %15 = arith.mulf %11, %14 : vector<16x512xf32>
    %16 = arith.truncf %15 : vector<16x512xf32> to vector<16x512xbf16>
    %c15_i32 = arith.constant 15 : i32
    %17 = tpu.dynamic_rotate %4 by %c15_i32 dim 1 : vector<16x512xf32>, i32 -> vector<16x512xf32>
    %c2 = arith.constant 2 : index
    %c0_10 = arith.constant 0 : index
    %c0_11 = arith.constant 0 : index
    %18 = vector.load %arg2[%c2, %c0_10, %c0_11] : memref<9x1x512xf32, #tpu.memory_space<vmem>>, vector<1x1x512xf32>
    %19 = vector.shape_cast %18 : vector<1x1x512xf32> to vector<1x512xf32>
    %20 = vector.broadcast %19 : vector<1x512xf32> to vector<16x512xf32>
    %21 = arith.mulf %17, %20 : vector<16x512xf32>
    %22 = arith.truncf %21 : vector<16x512xf32> to vector<16x512xbf16>
    %c1_i32 = arith.constant 1 : i32
    %23 = tpu.dynamic_rotate %4 by %c1_i32 dim 1 : vector<16x512xf32>, i32 -> vector<16x512xf32>
    %c3 = arith.constant 3 : index
    %c0_12 = arith.constant 0 : index
    %c0_13 = arith.constant 0 : index
    %24 = vector.load %arg2[%c3, %c0_12, %c0_13] : memref<9x1x512xf32, #tpu.memory_space<vmem>>, vector<1x1x512xf32>
    %25 = vector.shape_cast %24 : vector<1x1x512xf32> to vector<1x512xf32>
    %26 = vector.broadcast %25 : vector<1x512xf32> to vector<16x512xf32>
    %27 = arith.mulf %23, %26 : vector<16x512xf32>
    %28 = arith.truncf %27 : vector<16x512xf32> to vector<16x512xbf16>
    %c4 = arith.constant 4 : index
    %c0_14 = arith.constant 0 : index
    %c0_15 = arith.constant 0 : index
    %29 = vector.load %arg2[%c4, %c0_14, %c0_15] : memref<9x1x512xf32, #tpu.memory_space<vmem>>, vector<1x1x512xf32>
    %30 = vector.shape_cast %29 : vector<1x1x512xf32> to vector<1x512xf32>
    %31 = vector.broadcast %30 : vector<1x512xf32> to vector<16x512xf32>
    %32 = arith.mulf %4, %31 : vector<16x512xf32>
    %33 = arith.truncf %32 : vector<16x512xf32> to vector<16x512xbf16>
    %c511_i32 = arith.constant 511 : i32
    %34 = tpu.dynamic_rotate %4 by %c511_i32 dim 1 : vector<16x512xf32>, i32 -> vector<16x512xf32>
    %c5 = arith.constant 5 : index
    %c0_16 = arith.constant 0 : index
    %c0_17 = arith.constant 0 : index
    %35 = vector.load %arg2[%c5, %c0_16, %c0_17] : memref<9x1x512xf32, #tpu.memory_space<vmem>>, vector<1x1x512xf32>
    %36 = vector.shape_cast %35 : vector<1x1x512xf32> to vector<1x512xf32>
    %37 = vector.broadcast %36 : vector<1x512xf32> to vector<16x512xf32>
    %38 = arith.mulf %34, %37 : vector<16x512xf32>
    %39 = arith.truncf %38 : vector<16x512xf32> to vector<16x512xbf16>
    %c497_i32 = arith.constant 497 : i32
    %40 = tpu.dynamic_rotate %4 by %c497_i32 dim 1 : vector<16x512xf32>, i32 -> vector<16x512xf32>
    %c6 = arith.constant 6 : index
    %c0_18 = arith.constant 0 : index
    %c0_19 = arith.constant 0 : index
    %41 = vector.load %arg2[%c6, %c0_18, %c0_19] : memref<9x1x512xf32, #tpu.memory_space<vmem>>, vector<1x1x512xf32>
    %42 = vector.shape_cast %41 : vector<1x1x512xf32> to vector<1x512xf32>
    %43 = vector.broadcast %42 : vector<1x512xf32> to vector<16x512xf32>
    %44 = arith.mulf %40, %43 : vector<16x512xf32>
    %45 = arith.truncf %44 : vector<16x512xf32> to vector<16x512xbf16>
    %c496_i32 = arith.constant 496 : i32
    %46 = tpu.dynamic_rotate %4 by %c496_i32 dim 1 : vector<16x512xf32>, i32 -> vector<16x512xf32>
    %c7 = arith.constant 7 : index
    %c0_20 = arith.constant 0 : index
    %c0_21 = arith.constant 0 : index
    %47 = vector.load %arg2[%c7, %c0_20, %c0_21] : memref<9x1x512xf32, #tpu.memory_space<vmem>>, vector<1x1x512xf32>
    %48 = vector.shape_cast %47 : vector<1x1x512xf32> to vector<1x512xf32>
    %49 = vector.broadcast %48 : vector<1x512xf32> to vector<16x512xf32>
    %50 = arith.mulf %46, %49 : vector<16x512xf32>
    %51 = arith.truncf %50 : vector<16x512xf32> to vector<16x512xbf16>
    %c495_i32 = arith.constant 495 : i32
    %52 = tpu.dynamic_rotate %4 by %c495_i32 dim 1 : vector<16x512xf32>, i32 -> vector<16x512xf32>
    %c8 = arith.constant 8 : index
    %c0_22 = arith.constant 0 : index
    %c0_23 = arith.constant 0 : index
    %53 = vector.load %arg2[%c8, %c0_22, %c0_23] : memref<9x1x512xf32, #tpu.memory_space<vmem>>, vector<1x1x512xf32>
    %54 = vector.shape_cast %53 : vector<1x1x512xf32> to vector<1x512xf32>
    %55 = vector.broadcast %54 : vector<1x512xf32> to vector<16x512xf32>
    %56 = arith.mulf %52, %55 : vector<16x512xf32>
    %57 = arith.truncf %56 : vector<16x512xf32> to vector<16x512xbf16>
    %58 = tpu.concatenate %10, %16, %22, %28, %33, %39, %45, %51, %57 in 0 : vector<16x512xbf16>, vector<16x512xbf16>, vector<16x512xbf16>, vector<16x512xbf16>, vector<16x512xbf16>, vector<16x512xbf16>, vector<16x512xbf16>, vector<16x512xbf16>, vector<16x512xbf16> -> vector<144x512xbf16>
    %c0_24 = arith.constant 0 : index
    %c0_25 = arith.constant 0 : index
    %59 = vector.load %arg3[%c0_24, %c0_25] : memref<128x144xbf16, #tpu.memory_space<vmem>>, vector<128x144xbf16>
    %cst = arith.constant dense<0.000000e+00> : vector<128x512xf32>
    %60 = tpu.matmul %59, %58, %cst {dimension_numbers = #tpu.dot_dimension_numbers<[1], [0], [0], [1], [0, 0, 1, 1], [], []>} : vector<128x144xbf16>, vector<144x512xbf16>, vector<128x512xf32> -> vector<128x512xf32>
    %c0_26 = arith.constant 0 : index
    %c0_27 = arith.constant 0 : index
    %61 = vector.load %arg4[%c0_26, %c0_27] : memref<128x1xf32, #tpu.memory_space<vmem>>, vector<128x1xf32>
    %62 = vector.broadcast %61 : vector<128x1xf32> to vector<128x512xf32>
    %63 = arith.addf %60, %62 : vector<128x512xf32>
    %cst_28 = arith.constant 0.000000e+00 : f32
    %64 = vector.broadcast %cst_28 : f32 to vector<128x512xf32>
    %65 = arith.maximumf %63, %64 : vector<128x512xf32>
    %c0_29 = arith.constant 0 : index
    %c0_30 = arith.constant 0 : index
    %66 = vector.load %arg5[%c0_29, %c0_30] : memref<16x128xbf16, #tpu.memory_space<vmem>>, vector<16x128xbf16>
    %67 = arith.truncf %65 : vector<128x512xf32> to vector<128x512xbf16>
    %cst_31 = arith.constant dense<0.000000e+00> : vector<16x512xf32>
    %68 = tpu.matmul %66, %67, %cst_31 {dimension_numbers = #tpu.dot_dimension_numbers<[1], [0], [0], [1], [0, 0, 1, 1], [], []>} : vector<16x128xbf16>, vector<128x512xbf16>, vector<16x512xf32> -> vector<16x512xf32>
    %c0_32 = arith.constant 0 : index
    %c0_33 = arith.constant 0 : index
    %69 = vector.load %arg6[%c0_32, %c0_33] : memref<16x1xf32, #tpu.memory_space<vmem>>, vector<16x1xf32>
    %70 = vector.broadcast %69 : vector<16x1xf32> to vector<16x512xf32>
    %71 = arith.addf %68, %70 : vector<16x512xf32>
    %72 = arith.addf %4, %71 : vector<16x512xf32>
    %73 = vector.extract_strided_slice %72 {offsets = [0, 0], sizes = [16, 256], strides = [1, 1]} : vector<16x512xf32> to vector<16x256xf32>
    %c0_34 = arith.constant 0 : index
    %c0_35 = arith.constant 0 : index
    %c0_36 = arith.constant 0 : index
    %74 = vector.load %arg7[%c0_34, %c0_35, %c0_36] : memref<2x16x256xf32, #tpu.memory_space<vmem>>, vector<1x16x256xf32>
    %75 = vector.shape_cast %74 : vector<1x16x256xf32> to vector<16x256xf32>
    %76 = vector.shape_cast %73 : vector<16x256xf32> to vector<1x16x256xf32>
    tpu.vector_store %arg7[%c0_34, %c0_35, %c0_36], %76 {strides = array<i32>} : memref<2x16x256xf32, #tpu.memory_space<vmem>>, vector<1x16x256xf32>,
    %77 = vector.extract_strided_slice %72 {offsets = [0, 256], sizes = [16, 256], strides = [1, 1]} : vector<16x512xf32> to vector<16x256xf32>
    %c1_37 = arith.constant 1 : index
    %c0_38 = arith.constant 0 : index
    %c0_39 = arith.constant 0 : index
    %78 = vector.load %arg7[%c1_37, %c0_38, %c0_39] : memref<2x16x256xf32, #tpu.memory_space<vmem>>, vector<1x16x256xf32>
    %79 = vector.shape_cast %78 : vector<1x16x256xf32> to vector<16x256xf32>
    %80 = vector.shape_cast %77 : vector<16x256xf32> to vector<1x16x256xf32>
    tpu.vector_store %arg7[%c1_37, %c0_38, %c0_39], %80 {strides = array<i32>} : memref<2x16x256xf32, #tpu.memory_space<vmem>>, vector<1x16x256xf32>,
    return
  }
  func.func @transform_0(%arg0: i32) -> (i32, i32, i32) {
    %c0_i32 = arith.constant 0 : i32
    %c0_i32_0 = arith.constant 0 : i32
    %c0_i32_1 = arith.constant 0 : i32
    return %arg0, %c0_i32, %c0_i32_0 : i32, i32, i32
  }
  func.func @transform_1(%arg0: i32) -> (i32, i32, i32) {
    %c0_i32 = arith.constant 0 : i32
    %c0_i32_0 = arith.constant 0 : i32
    %c0_i32_1 = arith.constant 0 : i32
    %c0_i32_2 = arith.constant 0 : i32
    return %c0_i32, %c0_i32_0, %c0_i32_1 : i32, i32, i32
  }
  func.func @transform_2(%arg0: i32) -> (i32, i32) {
    %c0_i32 = arith.constant 0 : i32
    %c0_i32_0 = arith.constant 0 : i32
    %c0_i32_1 = arith.constant 0 : i32
    return %c0_i32, %c0_i32_0 : i32, i32
  }
  func.func @transform_3(%arg0: i32) -> (i32, i32) {
    %c0_i32 = arith.constant 0 : i32
    %c0_i32_0 = arith.constant 0 : i32
    %c0_i32_1 = arith.constant 0 : i32
    return %c0_i32, %c0_i32_0 : i32, i32
  }
  func.func @transform_4(%arg0: i32) -> (i32, i32) {
    %c0_i32 = arith.constant 0 : i32
    %c0_i32_0 = arith.constant 0 : i32
    %c0_i32_1 = arith.constant 0 : i32
    return %c0_i32, %c0_i32_0 : i32, i32
  }
  func.func @transform_5(%arg0: i32) -> (i32, i32) {
    %c0_i32 = arith.constant 0 : i32
    %c0_i32_0 = arith.constant 0 : i32
    %c0_i32_1 = arith.constant 0 : i32
    return %c0_i32, %c0_i32_0 : i32, i32
  }
  func.func @transform_6(%arg0: i32) -> (i32, i32, i32) {
    %c0_i32 = arith.constant 0 : i32
    %c0_i32_0 = arith.constant 0 : i32
    %c0_i32_1 = arith.constant 0 : i32
    return %arg0, %c0_i32, %c0_i32_0 : i32, i32, i32
  }
}

</mosaic_0001>

<bundles_post_ra>
// kernel: tpu_custom_call.1
= control target key start
LH: loop header
LB: loop body
LE: loop exit
PB: predicated region body
PF: predicated region fallthrough
CT: control target
= control target key end

     0   :  { %s1335_s25 = smov 17   ;;  %s1880_s0 = inlined_call_operand.vmem [shape: f32[2,16,256], index: 0, kind: input, shape index: {}]   ;;  %s1881_s1 = inlined_call_operand.vmem [shape: f32[9,1,512], index: 1, kind: input, shape index: {}]   ;;  %s1882_s2 = inlined_call_operand.vmem [shape: bf16[128,144], index: 2, kind: input, shape index: {}]   ;;  %s1883_s3 = inlined_call_operand.vmem [shape: f32[128,1], index: 3, kind: input, shape index: {}]   ;;  %s1884_s4 = inlined_call_operand.vmem [shape: bf16[16,128], index: 4, kind: input, shape index: {}]   ;;  %s1885_s5 = inlined_call_operand.vmem [shape: f32[16,1], index: 5, kind: input, shape index: {}]   ;;  %s1886_s6 = inlined_call_operand.hbm [shape: f32[2,16,256], index: 6, kind: output, shape index: {}]  }
   0x1   :  { %v1384_v0 = vld [vmem:[%s1880_s0 + $0x8] sm:$0xff]  ;;  %v1389_v1 = vld [vmem:[%s1880_s0] sm:$0xff]  ;;  %v1396_v2 = vld [vmem:[%s1880_s0 + $0x18] sm:$0xff] }
   0x2   :  { %38 = vrot.lane.b32.xlu1 %v1384_v0, %s1335_s25  ;;  %34 = vrot.lane.b32.xlu0 %v1389_v1, %s1335_s25  ;;  %v1401_v3 = vld [vmem:[%s1880_s0 + $0x10] sm:$0xff]  ;;  %v1413_v5 = vld [vmem:[%s1880_s0 + $0x20] sm:$0xff] }
   0x3   :  { %v1406_v4 = vld [vmem:[%s1880_s0 + $0x30] sm:$0xff]  ;;  %v1418_v6 = vld [vmem:[%s1880_s0 + $0x38] sm:$0xff]  ;;  %v1423_v7 = vld [vmem:[%s1880_s0 + $0x28] sm:$0xff] }
   0x6   :  { %40 = vrot.lane.b32.xlu1 %v1396_v2, %s1335_s25  ;;  %36 = vrot.lane.b32.xlu0 %v1401_v3, %s1335_s25 }
   0xa   :  { %44 = vrot.lane.b32.xlu1 %v1406_v4, %s1335_s25  ;;  %42 = vrot.lane.b32.xlu0 %v1413_v5, %s1335_s25 }
   0xb   :  { %11 = vsyncpa [#allocation3], 0  ;;  %s1336_s14 = smov 16   ;;  %s1337_s15 = smov 15   ;;  %v50_v8 = vlaneseq  ;;  %v61_v12 = vld [vmem:[%s1881_s1] sm:$0xf] }
   0xc   :  { %s1338_s16 = smov 1   ;;  %s1339_s17 = smov 127   ;;  %v1280_v13 = vld [vmem:[%s1882_s2 + $0x4] ss:$8 sps:$4 sm:$0xff]   ;;  %vm734_vm0 = vcmask 130048  }
   0xd   :  { %s1340_s18 = smov 113   ;;  %s1341_s19 = smov 112   ;;  %v64_v9 = vshrl.u32 %v50_v8, 7  ;;  %v1485_v10 = vand.u32 127, %v50_v8  ;;  %1248 = vmatprep.mubr.msk.bf16.mxu0 %vm734_vm0, %v1280_v13  ;;  %1256 = vmatprep.mubr.msk.bf16.mxu1 %vm734_vm0, %v1280_v13  ;;  %v1224_v46 = vld [vmem:[%s1881_s1 + $0x4] sm:$0xf] }
   0xe   :  { %48 = vrot.lane.b32.xlu1 %v1418_v6, %s1335_s25  ;;  %46 = vrot.lane.b32.xlu0 %v1423_v7, %s1335_s25  ;;  %s1342_s20 = smov 111  }
   0xf   :  { %v1491_v11 = vsub.s32 1, %v64_v9  ;;  %vm52_vm1 = vcmp.lt.s32.totalorder %v1485_v10, 17  ;;  %v1509_v20 = vsub.s32 2, %v64_v9  ;;  %v1517_v24 = vsub.s32 0, %v64_v9 }
  0x10   :  { %v1519_v25 = vsub.s32 3, %v64_v9  ;;  %vm111_vm2 = vcmp.lt.s32.totalorder %v1485_v10, 16  ;;  %vm171_vm3 = vcmp.lt.s32.totalorder %v1485_v10, 15  ;;  %vm231_vm4 = vcmp.lt.s32.totalorder %v1485_v10, 1 }
  0x11   :  { %v70_v16 = vrot.slane %v61_v12, %v1491_v11  ;;  %v74_v26 = vrot.slane %v61_v12, %v1509_v20  ;;  %v66_v32 = vrot.slane %v61_v12, %v1517_v24  ;;  %v130_v52 = vrot.slane %v1224_v46, %v1491_v11 }
  0x12   :  { %97 = vrot.lane.b32.xlu1 %v1401_v3, %s1336_s14  ;;  %95 = vrot.lane.b32.xlu0 %v1389_v1, %s1336_s14  ;;  %v78_v33 = vrot.slane %v61_v12, %v1519_v25  ;;  %v134_v59 = vrot.slane %v1224_v46, %v1509_v20  ;;  %v126_v9 = vrot.slane %v1224_v46, %v1517_v24  ;;  %vm326_vm5 = vcmp.lt.s32.totalorder %v1485_v10, 127 }
  0x13   :  { %v138_v12 = vrot.slane %v1224_v46, %v1519_v25  ;;  %vm386_vm6 = vcmp.lt.s32.totalorder %v1485_v10, 113  ;;  %vm446_vm7 = vcmp.lt.s32.totalorder %v1485_v10, 112  ;;  %vm506_vm8 = vcmp.lt.s32.totalorder %v1485_v10, 111  ;;  %v1283_v10 = vld [vmem:[%s1882_s2 + $0x10] ss:$8 sps:$4 sm:$0xff]  }
  0x16   :  { %101 = vrot.lane.b32.xlu1 %v1396_v2, %s1336_s14  ;;  %99 = vrot.lane.b32.xlu0 %v1384_v0, %s1336_s14 }
  0x1a   :  { %105 = vrot.lane.b32.xlu1 %v1406_v4, %s1336_s14  ;;  %103 = vrot.lane.b32.xlu0 %v1413_v5, %s1336_s14 }
  0x1e   :  { %109 = vrot.lane.b32.xlu1 %v1418_v6, %s1336_s14  ;;  %107 = vrot.lane.b32.xlu0 %v1423_v7, %s1336_s14 }
  0x22   :  { %157 = vrot.lane.b32.xlu1 %v1401_v3, %s1337_s15  ;;  %155 = vrot.lane.b32.xlu0 %v1389_v1, %s1337_s15 }
  0x26   :  { %161 = vrot.lane.b32.xlu1 %v1396_v2, %s1337_s15  ;;  %159 = vrot.lane.b32.xlu0 %v1384_v0, %s1337_s15 }
  0x2a   :  { %165 = vrot.lane.b32.xlu1 %v1406_v4, %s1337_s15  ;;  %163 = vrot.lane.b32.xlu0 %v1413_v5, %s1337_s15 }
  0x2e   :  { %169 = vrot.lane.b32.xlu1 %v1418_v6, %s1337_s15  ;;  %167 = vrot.lane.b32.xlu0 %v1423_v7, %s1337_s15 }
  0x32   :  { %217 = vrot.lane.b32.xlu1 %v1401_v3, %s1338_s16  ;;  %215 = vrot.lane.b32.xlu0 %v1389_v1, %s1338_s16 }
  0x36   :  { %221 = vrot.lane.b32.xlu1 %v1396_v2, %s1338_s16  ;;  %219 = vrot.lane.b32.xlu0 %v1384_v0, %s1338_s16 }
  0x3a   :  { %225 = vrot.lane.b32.xlu1 %v1406_v4, %s1338_s16  ;;  %223 = vrot.lane.b32.xlu0 %v1413_v5, %s1338_s16 }
  0x3e   :  { %229 = vrot.lane.b32.xlu1 %v1418_v6, %s1338_s16  ;;  %227 = vrot.lane.b32.xlu0 %v1423_v7, %s1338_s16 }
  0x42   :  { %312 = vrot.lane.b32.xlu1 %v1401_v3, %s1339_s17  ;;  %310 = vrot.lane.b32.xlu0 %v1389_v1, %s1339_s17 }
  0x46   :  { %316 = vrot.lane.b32.xlu1 %v1396_v2, %s1339_s17  ;;  %314 = vrot.lane.b32.xlu0 %v1384_v0, %s1339_s17 }
  0x4a   :  { %320 = vrot.lane.b32.xlu1 %v1406_v4, %s1339_s17  ;;  %318 = vrot.lane.b32.xlu0 %v1413_v5, %s1339_s17 }
  0x4e   :  { %324 = vrot.lane.b32.xlu1 %v1418_v6, %s1339_s17  ;;  %322 = vrot.lane.b32.xlu0 %v1423_v7, %s1339_s17 }
  0x52   :  { %372 = vrot.lane.b32.xlu1 %v1401_v3, %s1340_s18  ;;  %370 = vrot.lane.b32.xlu0 %v1389_v1, %s1340_s18 }
  0x56   :  { %376 = vrot.lane.b32.xlu1 %v1396_v2, %s1340_s18  ;;  %374 = vrot.lane.b32.xlu0 %v1384_v0, %s1340_s18 }
  0x5a   :  { %380 = vrot.lane.b32.xlu1 %v1406_v4, %s1340_s18  ;;  %378 = vrot.lane.b32.xlu0 %v1413_v5, %s1340_s18 }
  0x5e   :  { %384 = vrot.lane.b32.xlu1 %v1418_v6, %s1340_s18  ;;  %382 = vrot.lane.b32.xlu0 %v1423_v7, %s1340_s18 }
  0x62   :  { %432 = vrot.lane.b32.xlu1 %v1401_v3, %s1341_s19  ;;  %430 = vrot.lane.b32.xlu0 %v1389_v1, %s1341_s19 }
  0x66   :  { %436 = vrot.lane.b32.xlu1 %v1396_v2, %s1341_s19  ;;  %434 = vrot.lane.b32.xlu0 %v1384_v0, %s1341_s19 }
  0x6a   :  { %440 = vrot.lane.b32.xlu1 %v1406_v4, %s1341_s19  ;;  %438 = vrot.lane.b32.xlu0 %v1413_v5, %s1341_s19 }
  0x6e   :  { %444 = vrot.lane.b32.xlu1 %v1418_v6, %s1341_s19  ;;  %442 = vrot.lane.b32.xlu0 %v1423_v7, %s1341_s19  ;;  %s1344_s19 = smov [#allocation2]  }
  0x72   :  { %492 = vrot.lane.b32.xlu1 %v1401_v3, %s1342_s20  ;;  %490 = vrot.lane.b32.xlu0 %v1389_v1, %s1342_s20 }
  0x74   :  { %v39_v14 = vpop.permute.xlu1 %38  ;;  %v35_v15 = vpop.permute.xlu0 %34 }
  0x75   :  { %v57_v17 = vsel %vm52_vm1, %v35_v15, %v39_v14 }
  0x76   :  { %496 = vrot.lane.b32.xlu1 %v1396_v2, %s1342_s20  ;;  %494 = vrot.lane.b32.xlu0 %v1384_v0, %s1342_s20  ;;  %v84_v22 = vmul.f32 %v70_v16, %v57_v17 }
  0x78   :  { %v41_v18 = vpop.permute.xlu1 %40  ;;  %v37_v19 = vpop.permute.xlu0 %36 }
  0x79   :  { %v58_v21 = vsel %vm52_vm1, %v37_v19, %v41_v18 }
  0x7a   :  { %500 = vrot.lane.b32.xlu1 %v1406_v4, %s1342_s20  ;;  %498 = vrot.lane.b32.xlu0 %v1413_v5, %s1342_s20  ;;  %v88_v23 = vmul.f32 %v70_v16, %v58_v21 }
  0x7c   :  { %v45_v27 = vpop.permute.xlu1 %44  ;;  %v43_v28 = vpop.permute.xlu0 %42  ;;  %v92_v29 = vpack.c.bf16 %v88_v23, %v84_v22 }
  0x7d   :  { %v56_v30 = vsel %vm52_vm1, %v41_v18, %v45_v27  ;;  %v55_v31 = vsel %vm52_vm1, %v39_v14, %v43_v28 }
  0x7e   :  { %504 = vrot.lane.b32.xlu1 %v1418_v6, %s1342_s20  ;;  %502 = vrot.lane.b32.xlu0 %v1423_v7, %s1342_s20  ;;  %v89_v34 = vmul.f32 %v74_v26, %v56_v30  ;;  %v85_v35 = vmul.f32 %v74_v26, %v55_v31  ;;  %s1209_s20 = sshll.u32 %s1344_s19, 4  ;;  %s1210_s20 = int_to_ptr.vmem [resolvable:$true] %s1209_s20 }
  0x7f   :  { %759 = vmatprep.subr.bf16.mxu0 %v92_v29  ;;  %p1316_p1 = scmp.lt.s32.totalorder %s1210_s20, %s1210_s20 }
  0x80   :  { %v49_v36 = vpop.permute.xlu1 %48  ;;  %v47_v37 = vpop.permute.xlu0 %46  ;;  %v93_v51 = vpack.c.bf16 %v89_v34, %v85_v35 }
  0x81   :  { %v54_v38 = vsel %vm52_vm1, %v45_v27, %v49_v36  ;;  %v60_v39 = vsel %vm52_vm1, %v49_v36, %v37_v19  ;;  %v53_v40 = vsel %vm52_vm1, %v43_v28, %v47_v37  ;;  %v59_v41 = vsel %vm52_vm1, %v47_v37, %v35_v15  ;;  %v1225_v28 = vld [vmem:[%s1881_s1 + $0x8] sm:$0xf] }
  0x82   :  { %v87_v42 = vmul.f32 %v66_v32, %v60_v39  ;;  %v83_v43 = vmul.f32 %v66_v32, %v59_v41  ;;  %v86_v44 = vmul.f32 %v78_v33, %v53_v40  ;;  %v90_v45 = vmul.f32 %v78_v33, %v54_v38 }
  0x83   :  { %v190_v34 = vrot.slane %v1225_v28, %v1491_v11  ;;  %v194_v41 = vrot.slane %v1225_v28, %v1509_v20 }
  0x84   :  { %v98_v47 = vpop.permute.xlu1 %97  ;;  %v96_v48 = vpop.permute.xlu0 %95  ;;  %v91_v49 = vpack.c.bf16 %v87_v42, %v83_v43  ;;  %v94_v50 = vpack.c.bf16 %v90_v45, %v86_v44 }
  0x86   :  { %760 = vmatpush1.bf16.msra.mxu0 %v91_v49  ;;  %872 = vmatprep.subr.bf16.mxu1 %v94_v50 }
  0x87   :  { %873 = vmatpush1.bf16.msra.mxu1 %v93_v51 }
  0x88   :  { %v102_v53 = vpop.permute.xlu1 %101  ;;  %v100_v54 = vpop.permute.xlu0 %99 }
  0x89   :  { %v117_v55 = vsel %vm111_vm2, %v98_v47, %v102_v53  ;;  %v116_v56 = vsel %vm111_vm2, %v96_v48, %v100_v54 }
  0x8a   :  { %v148_v57 = vmul.f32 %v130_v52, %v117_v55  ;;  %v144_v58 = vmul.f32 %v130_v52, %v116_v56 }
  0x8c   :  { %v106_v60 = vpop.permute.xlu1 %105  ;;  %v104_v61 = vpop.permute.xlu0 %103  ;;  %v152_v62 = vpack.c.bf16 %v148_v57, %v144_v58 }
  0x8d   :  { %v115_v63 = vsel %vm111_vm2, %v102_v53, %v106_v60  ;;  %v114_v8 = vsel %vm111_vm2, %v100_v54, %v104_v61 }
  0x8e   :  { %761 = vmatprep.subr.bf16.mxu0 %v152_v62  ;;  %v149_v13 = vmul.f32 %v134_v59, %v115_v63  ;;  %v145_v14 = vmul.f32 %v134_v59, %v114_v8 }
  0x90   :  { %v110_v15 = vpop.permute.xlu1 %109  ;;  %v108_v16 = vpop.permute.xlu0 %107  ;;  %v153_v33 = vpack.c.bf16 %v149_v13, %v145_v14  ;;  %v1227_v14 = vld [vmem:[%s1881_s1 + $0x10] sm:$0xf] }
  0x91   :  { %v113_v17 = vsel %vm111_vm2, %v106_v60, %v110_v15  ;;  %v119_v18 = vsel %vm111_vm2, %v110_v15, %v98_v47  ;;  %v112_v19 = vsel %vm111_vm2, %v104_v61, %v108_v16  ;;  %v118_v21 = vsel %vm111_vm2, %v108_v16, %v96_v48  ;;  %v1226_v61 = vld [vmem:[%s1881_s1 + $0xc] sm:$0xf] }
  0x92   :  { %v147_v22 = vmul.f32 %v126_v9, %v119_v18  ;;  %v150_v23 = vmul.f32 %v138_v12, %v113_v17  ;;  %v143_v26 = vmul.f32 %v126_v9, %v118_v21  ;;  %v146_v27 = vmul.f32 %v138_v12, %v112_v19 }
  0x93   :  { %v186_v47 = vrot.slane %v1225_v28, %v1517_v24  ;;  %v198_v48 = vrot.slane %v1225_v28, %v1519_v25  ;;  %v250_v13 = vrot.slane %v1226_v61, %v1491_v11 }
  0x94   :  { %v158_v29 = vpop.permute.xlu1 %157  ;;  %v156_v30 = vpop.permute.xlu0 %155  ;;  %v151_v31 = vpack.c.bf16 %v147_v22, %v143_v26  ;;  %v154_v32 = vpack.c.bf16 %v150_v23, %v146_v27  ;;  %v285_v22 = vrot.slane %v1227_v14, %v1491_v11  ;;  %v281_v23 = vrot.slane %v1227_v14, %v1517_v24 }
  0x95   :  { %v293_v26 = vrot.slane %v1227_v14, %v1519_v25  ;;  %v254_v27 = vrot.slane %v1226_v61, %v1509_v20 }
  0x96   :  { %762 = vmatpush1.bf16.msra.mxu0 %v151_v31  ;;  %874 = vmatprep.subr.bf16.mxu1 %v154_v32 }
  0x97   :  { %875 = vmatpush1.bf16.msra.mxu1 %v153_v33  ;;  %v246_v33 = vrot.slane %v1226_v61, %v1517_v24 }
  0x98   :  { %v162_v35 = vpop.permute.xlu1 %161  ;;  %v160_v36 = vpop.permute.xlu0 %159 }
  0x99   :  { %v177_v37 = vsel %vm171_vm3, %v158_v29, %v162_v35  ;;  %v176_v38 = vsel %vm171_vm3, %v156_v30, %v160_v36 }
  0x9a   :  { %v208_v39 = vmul.f32 %v190_v34, %v177_v37  ;;  %v204_v40 = vmul.f32 %v190_v34, %v176_v38  ;;  %v258_v34 = vrot.slane %v1226_v61, %v1519_v25  ;;  %v298_v37 = vmul.f32 %v281_v23, %v1389_v1  ;;  %v567_v38 = vld [vmem:[%s1883_s3 + $0x8] sm:$0xff] }
  0x9c   :  { %v166_v42 = vpop.permute.xlu1 %165  ;;  %v164_v43 = vpop.permute.xlu0 %163  ;;  %v212_v44 = vpack.c.bf16 %v208_v39, %v204_v40  ;;  %v566_v39 = vld [vmem:[%s1883_s3] sm:$0xff]  ;;  %v302_v40 = vmul.f32 %v281_v23, %v1401_v3 }
  0x9d   :  { %v175_v45 = vsel %vm171_vm3, %v162_v35, %v166_v42  ;;  %v174_v46 = vsel %vm171_vm3, %v160_v36, %v164_v43  ;;  %v299_v35 = vmul.f32 %v285_v22, %v1384_v0  ;;  %v303_v36 = vmul.f32 %v285_v22, %v1396_v2 }
  0x9e   :  { %763 = vmatprep.subr.bf16.mxu0 %v212_v44  ;;  %v209_v49 = vmul.f32 %v194_v41, %v175_v45  ;;  %v205_v50 = vmul.f32 %v194_v41, %v174_v46  ;;  %v301_v41 = vmul.f32 %v1423_v7, %v293_v26  ;;  %v305_v45 = vmul.f32 %v1418_v6, %v293_v26  ;;  %v568_v6 = vld [vmem:[%s1883_s3 + $0x10] sm:$0xff] }
  0xa0   :  { %v170_v51 = vpop.permute.xlu1 %169  ;;  %v168_v52 = vpop.permute.xlu0 %167  ;;  %v213_v12 = vpack.c.bf16 %v209_v49, %v205_v50 }
  0xa1   :  { %v173_v53 = vsel %vm171_vm3, %v166_v42, %v170_v51  ;;  %v179_v54 = vsel %vm171_vm3, %v170_v51, %v158_v29  ;;  %v172_v55 = vsel %vm171_vm3, %v164_v43, %v168_v52  ;;  %v178_v56 = vsel %vm171_vm3, %v168_v52, %v156_v30  ;;  %v569_v52 = vld [vmem:[%s1883_s3 + $0x18] sm:$0xff] }
  0xa2   :  { %v207_v57 = vmul.f32 %v186_v47, %v179_v54  ;;  %v210_v58 = vmul.f32 %v198_v48, %v173_v53  ;;  %v203_v59 = vmul.f32 %v186_v47, %v178_v56  ;;  %v206_v60 = vmul.f32 %v198_v48, %v172_v55 }
  0xa3   :  { %v289_v42 = vrot.slane %v1227_v14, %v1509_v20  ;;  %v1343_v43 = vmov 0   ;;  %v307_v53 = vpack.c.bf16 %v303_v36, %v299_v35 }
  0xa4   :  { %v218_v62 = vpop.permute.xlu1 %217  ;;  %v216_v63 = vpop.permute.xlu0 %215  ;;  %v211_v8 = vpack.c.bf16 %v207_v57, %v203_v59  ;;  %v214_v9 = vpack.c.bf16 %v210_v58, %v206_v60  ;;  %1277 = vset.pattern.permute.xlu1 %v1343_v43  ;;  %1276 = vset.pattern.permute.xlu0 %v1343_v43  ;;  %v309_v60 = vpack.c.bf16 %v305_v45, %v301_v41  ;;  %v577_v45 = vld [vmem:[%s1883_s3 + $0x58] sm:$0xff] }
  0xa5   :  { %589 = vperm.xlu1 %1277, %v567_v38   ;;  %584 = vperm.xlu0 %1276, %v566_v39   ;;  %v300_v54 = vmul.f32 %v1413_v5, %v289_v42  ;;  %v304_v55 = vmul.f32 %v1406_v4, %v289_v42  ;;  %v306_v4 = vpack.c.bf16 %v302_v40, %v298_v37  ;;  %v571_v5 = vld [vmem:[%s1883_s3 + $0x28] sm:$0xff]  ;;  %v576_v42 = vld [vmem:[%s1883_s3 + $0x50] sm:$0xff] }
  0xa6   :  { %764 = vmatpush1.bf16.msra.mxu0 %v211_v8  ;;  %876 = vmatprep.subr.bf16.mxu1 %v214_v9 }
  0xa7   :  { %877 = vmatpush1.bf16.msra.mxu1 %v213_v12  ;;  %v308_v8 = vpack.c.bf16 %v304_v55, %v300_v54  ;;  %v580_v55 = vld [vmem:[%s1883_s3 + $0x70] sm:$0xff] }
  0xa8   :  { %v222_v15 = vpop.permute.xlu1 %221  ;;  %v220_v16 = vpop.permute.xlu0 %219 }
  0xa9   :  { %v237_v17 = vsel %vm231_vm4, %v218_v62, %v222_v15  ;;  %v236_v18 = vsel %vm231_vm4, %v216_v63, %v220_v16  ;;  %594 = vperm.xlu1 %1277, %v568_v6   ;;  %599 = vperm.xlu0 %1276, %v569_v52  }
  0xaa   :  { %v268_v19 = vmul.f32 %v250_v13, %v237_v17  ;;  %v264_v21 = vmul.f32 %v250_v13, %v236_v18  ;;  %v573_v18 = vld [vmem:[%s1883_s3 + $0x38] sm:$0xff] }
  0xac   :  { %v226_v28 = vpop.permute.xlu1 %225  ;;  %v224_v29 = vpop.permute.xlu0 %223  ;;  %v272_v30 = vpack.c.bf16 %v268_v19, %v264_v21 }
  0xad   :  { %v235_v31 = vsel %vm231_vm4, %v222_v15, %v226_v28  ;;  %v234_v32 = vsel %vm231_vm4, %v220_v16, %v224_v29  ;;  %609 = vperm.xlu0 %1276, %v571_v5   ;;  %v572_v16 = vld [vmem:[%s1883_s3 + $0x30] sm:$0xff] }
  0xae   :  { %765 = vmatprep.subr.bf16.mxu0 %v272_v30  ;;  %v269_v0 = vmul.f32 %v254_v27, %v235_v31  ;;  %v265_v1 = vmul.f32 %v254_v27, %v234_v32 }
  0xb0   :  { %v230_v2 = vpop.permute.xlu1 %229  ;;  %v228_v44 = vpop.permute.xlu0 %227  ;;  %v273_v61 = vpack.c.bf16 %v269_v0, %v265_v1 }
  0xb1   :  { %v233_v3 = vsel %vm231_vm4, %v226_v28, %v230_v2  ;;  %v239_v7 = vsel %vm231_vm4, %v230_v2, %v218_v62  ;;  %v232_v46 = vsel %vm231_vm4, %v224_v29, %v228_v44  ;;  %v238_v47 = vsel %vm231_vm4, %v228_v44, %v216_v63  ;;  %v1228_v62 = vld [vmem:[%s1881_s1 + $0x14] sm:$0xf]  ;;  %v570_v63 = vld [vmem:[%s1883_s3 + $0x20] sm:$0xff]  ;;  %619 = vperm.xlu0 %1276, %v573_v18  }
  0xb2   :  { %v267_v48 = vmul.f32 %v246_v33, %v239_v7  ;;  %v270_v49 = vmul.f32 %v258_v34, %v233_v3  ;;  %v263_v50 = vmul.f32 %v246_v33, %v238_v47  ;;  %v266_v51 = vmul.f32 %v258_v34, %v232_v46  ;;  %604 = vperm.xlu1 %1277, %v570_v63   ;;  %v574_v28 = vld [vmem:[%s1883_s3 + $0x40] sm:$0xff]  ;;  %v575_v33 = vld [vmem:[%s1883_s3 + $0x48] sm:$0xff] }
  0xb3   :  { %v341_v9 = vrot.slane %v1228_v62, %v1517_v24  ;;  %v345_v17 = vrot.slane %v1228_v62, %v1491_v11  ;;  %v349_v31 = vrot.slane %v1228_v62, %v1509_v20  ;;  %v353_v32 = vrot.slane %v1228_v62, %v1519_v25 }
  0xb4   :  { %v313_v56 = vpop.permute.xlu1 %312  ;;  %v311_v57 = vpop.permute.xlu0 %310  ;;  %v271_v58 = vpack.c.bf16 %v267_v48, %v263_v50  ;;  %v274_v59 = vpack.c.bf16 %v270_v49, %v266_v51  ;;  %v1229_v48 = vld [vmem:[%s1881_s1 + $0x18] sm:$0xf]  ;;  %v578_v49 = vld [vmem:[%s1883_s3 + $0x60] sm:$0xff]  ;;  %v579_v50 = vld [vmem:[%s1883_s3 + $0x68] sm:$0xff] }
  0xb5   :  { %629 = vperm.xlu0 %1276, %v575_v33   ;;  %v401_v51 = vrot.slane %v1229_v48, %v1517_v24  ;;  %v1230_v33 = vld [vmem:[%s1881_s1 + $0x1c] sm:$0xf] }
  0xb6   :  { %766 = vmatpush1.bf16.msra.mxu0 %v271_v58  ;;  %878 = vmatprep.subr.bf16.mxu1 %v274_v59 }
  0xb7   :  { %879 = vmatpush1.bf16.msra.mxu1 %v273_v61  ;;  %767 = vmatprep.subr.bf16.mxu0 %v307_v53 }
  0xb8   :  { %v317_v12 = vpop.permute.xlu1 %316  ;;  %v315_v13 = vpop.permute.xlu0 %314  ;;  %880 = vmatprep.subr.bf16.mxu1 %v309_v60  ;;  %614 = vperm.xlu1 %1277, %v572_v16  }
  0xb9   :  { %v332_v14 = vsel %vm326_vm5, %v313_v56, %v317_v12  ;;  %v331_v15 = vsel %vm326_vm5, %v311_v57, %v315_v13  ;;  %639 = vperm.xlu0 %1276, %v577_v45  }
  0xba   :  { %768 = vmatpush1.bf16.msra.mxu0 %v306_v4  ;;  %v362_v19 = vmul.f32 %v341_v9, %v332_v14  ;;  %v358_v21 = vmul.f32 %v341_v9, %v331_v15  ;;  %v1083_v4 = vld [vmem:[%s1885_s5] sm:$0xff]  ;;  %v409_v9 = vrot.slane %v1229_v48, %v1509_v20 }
  0xbb   :  { %881 = vmatpush1.bf16.msra.mxu1 %v308_v8 }
  0xbc   :  { %v321_v22 = vpop.permute.xlu1 %320  ;;  %v319_v23 = vpop.permute.xlu0 %318  ;;  %v366_v37 = vpack.c.bf16 %v362_v19, %v358_v21  ;;  %624 = vperm.xlu1 %1277, %v574_v28  }
  0xbd   :  { %v330_v26 = vsel %vm326_vm5, %v317_v12, %v321_v22  ;;  %v329_v27 = vsel %vm326_vm5, %v315_v13, %v319_v23  ;;  %649 = vperm.xlu0 %1276, %v579_v50   ;;  %v413_v12 = vrot.slane %v1229_v48, %v1519_v25  ;;  %v1084_v13 = vld [vmem:[%s1885_s5 + $0x8] sm:$0xff]  ;;  %s1311_s5 = scalar_lea.vmem %s1210_s20, 1024 }
  0xbe   :  { %v363_v29 = vmul.f32 %v345_v17, %v330_v26  ;;  %v359_v30 = vmul.f32 %v345_v17, %v329_v27  ;;  %p1312_p0 = scmp.ne.s32.totalorder %s1210_s20, %s1311_s5  ;;  %p1317_p2 = scmp.lt.s32.totalorder %s1311_s5, %s1311_s5 }
  0xc0   :  { %v325_v34 = vpop.permute.xlu1 %324  ;;  %v323_v35 = vpop.permute.xlu0 %322  ;;  %v367_v36 = vpack.c.bf16 %v363_v29, %v359_v30  ;;  %634 = vperm.xlu1 %1277, %v576_v42   ;;  %p1318_p3 = por %p1317_p2, %p1316_p1 }
  0xc1   :  { %v328_v38 = vsel %vm326_vm5, %v321_v22, %v325_v34  ;;  %v334_v39 = vsel %vm326_vm5, %v325_v34, %v313_v56  ;;  %v327_v40 = vsel %vm326_vm5, %v319_v23, %v323_v35  ;;  %v333_v41 = vsel %vm326_vm5, %v323_v35, %v311_v57  ;;  %v581_v57 = vld [vmem:[%s1883_s3 + $0x78] sm:$0xff] }
  0xc2   :  { %v364_v0 = vmul.f32 %v349_v31, %v328_v38  ;;  %v365_v1 = vmul.f32 %v353_v32, %v334_v39  ;;  %v360_v2 = vmul.f32 %v349_v31, %v327_v40  ;;  %v361_v44 = vmul.f32 %v353_v32, %v333_v41  ;;  %769 = vmatprep.subr.bf16.mxu0 %v367_v36  ;;  %p1319_p4 = pnand %p1318_p3, %p1312_p0 }
  0xc3   :  { %770 = vmatpush1.bf16.msra.mxu0 %v366_v37  ;;  %v405_v56 = vrot.slane %v1229_v48, %v1491_v11  ;;  %659 = vperm.xlu0 %1276, %v581_v57   ;;  %v461_v34 = vrot.slane %v1230_v33, %v1517_v24  ;;  %v465_v39 = vrot.slane %v1230_v33, %v1491_v11 }
  0xc4   :  { %v373_v3 = vpop.permute.xlu1 %372  ;;  %v371_v7 = vpop.permute.xlu0 %370  ;;  %v369_v46 = vpack.c.bf16 %v365_v1, %v361_v44  ;;  %v368_v47 = vpack.c.bf16 %v364_v0, %v360_v2  ;;  %644 = vperm.xlu1 %1277, %v578_v49  }
  0xc6   :  { %882 = vmatprep.subr.bf16.mxu1 %v369_v46 }
  0xc7   :  { %883 = vmatpush1.bf16.msra.mxu1 %v368_v47  ;;  %1092 = vperm.xlu0 %1276, %v1084_v13  }
  0xc8   :  { %v377_v6 = vpop.permute.xlu1 %376  ;;  %v375_v52 = vpop.permute.xlu0 %374  ;;  %654 = vperm.xlu1 %1277, %v580_v55  }
  0xc9   :  { %v392_v53 = vsel %vm386_vm6, %v373_v3, %v377_v6  ;;  %v391_v54 = vsel %vm386_vm6, %v371_v7, %v375_v52 }
  0xca   :  { %v422_v58 = vmul.f32 %v401_v51, %v392_v53  ;;  %v418_v59 = vmul.f32 %v401_v51, %v391_v54 }
  0xcc   :  { %v381_v60 = vpop.permute.xlu1 %380  ;;  %v379_v61 = vpop.permute.xlu0 %378  ;;  %v426_v17 = vpack.c.bf16 %v422_v58, %v418_v59  ;;  %1087 = vperm.xlu1 %1277, %v1083_v4  }
  0xcd   :  { %v390_v62 = vsel %vm386_vm6, %v377_v6, %v381_v60  ;;  %v389_v63 = vsel %vm386_vm6, %v375_v52, %v379_v61 }
  0xce   :  { %v423_v5 = vmul.f32 %v405_v56, %v390_v62  ;;  %v419_v8 = vmul.f32 %v405_v56, %v389_v63 }
  0xd0   :  { %v385_v14 = vpop.permute.xlu1 %384  ;;  %v383_v15 = vpop.permute.xlu0 %382  ;;  %v427_v16 = vpack.c.bf16 %v423_v5, %v419_v8 }
  0xd1   :  { %v388_v18 = vsel %vm386_vm6, %v381_v60, %v385_v14  ;;  %v394_v19 = vsel %vm386_vm6, %v385_v14, %v373_v3  ;;  %v387_v21 = vsel %vm386_vm6, %v379_v61, %v383_v15  ;;  %v393_v22 = vsel %vm386_vm6, %v383_v15, %v371_v7  ;;  %v1231_v61 = vld [vmem:[%s1881_s1 + $0x20] sm:$0xf] }
  0xd2   :  { %v424_v23 = vmul.f32 %v409_v9, %v388_v18  ;;  %v425_v26 = vmul.f32 %v413_v12, %v394_v19  ;;  %v420_v27 = vmul.f32 %v409_v9, %v387_v21  ;;  %v421_v28 = vmul.f32 %v413_v12, %v393_v22  ;;  %771 = vmatprep.subr.bf16.mxu0 %v427_v16 }
  0xd3   :  { %772 = vmatpush1.bf16.msra.mxu0 %v426_v17  ;;  %v469_v3 = vrot.slane %v1230_v33, %v1509_v20  ;;  %v473_v7 = vrot.slane %v1230_v33, %v1519_v25  ;;  %v521_v62 = vrot.slane %v1231_v61, %v1517_v24  ;;  %v525_v9 = vrot.slane %v1231_v61, %v1491_v11  ;;  %v1278_v33 = vld [vmem:[%s1882_s2] ss:$8 sps:$4 sm:$0xff]  }
  0xd4   :  { %v433_v29 = vpop.permute.xlu1 %432  ;;  %v431_v30 = vpop.permute.xlu0 %430  ;;  %v429_v31 = vpack.c.bf16 %v425_v26, %v421_v28  ;;  %v428_v32 = vpack.c.bf16 %v424_v23, %v420_v27  ;;  %v529_v19 = vrot.slane %v1231_v61, %v1509_v20  ;;  %v533_v21 = vrot.slane %v1231_v61, %v1519_v25 }
  0xd6   :  { %884 = vmatprep.subr.bf16.mxu1 %v429_v31 }
  0xd7   :  { %885 = vmatpush1.bf16.msra.mxu1 %v428_v32 }
  0xd8   :  { %v437_v35 = vpop.permute.xlu1 %436  ;;  %v435_v36 = vpop.permute.xlu0 %434 }
  0xd9   :  { %v452_v37 = vsel %vm446_vm7, %v433_v29, %v437_v35  ;;  %v451_v38 = vsel %vm446_vm7, %v431_v30, %v435_v36 }
  0xda   :  { %v482_v40 = vmul.f32 %v461_v34, %v452_v37  ;;  %v478_v41 = vmul.f32 %v461_v34, %v451_v38  ;;  %v1281_v34 = vld [vmem:[%s1882_s2 + $0x14] ss:$8 sps:$4 sm:$0xff]   ;;  %v1284_v37 = vld [vmem:[%s1882_s2 + $0x24] ss:$8 sps:$4 sm:$0xff]   ;;  %v1286_v38 = vld [vmem:[%s1882_s2 + $0x20] ss:$8 sps:$4 sm:$0xff]  }
  0xdc   :  { %v441_v42 = vpop.permute.xlu1 %440  ;;  %v439_v0 = vpop.permute.xlu0 %438  ;;  %v486_v49 = vpack.c.bf16 %v482_v40, %v478_v41  ;;  %v1289_v40 = vld [vmem:[%s1882_s2 + $0x30] ss:$8 sps:$4 sm:$0xff]   ;;  %v1290_v41 = vld [vmem:[%s1882_s2 + $0x44] ss:$8 sps:$4 sm:$0xff]  }
  0xdd   :  { %v450_v1 = vsel %vm446_vm7, %v437_v35, %v441_v42  ;;  %v449_v2 = vsel %vm446_vm7, %v435_v36, %v439_v0 }
  0xde   :  { %v483_v44 = vmul.f32 %v465_v39, %v450_v1  ;;  %v479_v45 = vmul.f32 %v465_v39, %v449_v2  ;;  %v1287_v39 = vld [vmem:[%s1882_s2 + $0x34] ss:$8 sps:$4 sm:$0xff]   ;;  %v1295_v1 = vld [vmem:[%s1882_s2 + $0x50] ss:$8 sps:$4 sm:$0xff]   ;;  %v1296_v2 = vld [vmem:[%s1882_s2 + $0x64] ss:$8 sps:$4 sm:$0xff]  }
  0xe0   :  { %v445_v46 = vpop.permute.xlu1 %444  ;;  %v443_v47 = vpop.permute.xlu0 %442  ;;  %v487_v48 = vpack.c.bf16 %v483_v44, %v479_v45  ;;  %v1298_v44 = vld [vmem:[%s1882_s2 + $0x60] ss:$8 sps:$4 sm:$0xff]   ;;  %v1299_v45 = vld [vmem:[%s1882_s2 + $0x74] ss:$8 sps:$4 sm:$0xff]  }
  0xe1   :  { %v448_v50 = vsel %vm446_vm7, %v441_v42, %v445_v46  ;;  %v454_v51 = vsel %vm446_vm7, %v445_v46, %v433_v29  ;;  %v447_v6 = vsel %vm446_vm7, %v439_v0, %v443_v47  ;;  %v453_v52 = vsel %vm446_vm7, %v443_v47, %v431_v30  ;;  %v1292_v42 = vld [vmem:[%s1882_s2 + $0x40] ss:$8 sps:$4 sm:$0xff]   ;;  %v1293_v0 = vld [vmem:[%s1882_s2 + $0x54] ss:$8 sps:$4 sm:$0xff]  }
  0xe2   :  { %v484_v53 = vmul.f32 %v469_v3, %v448_v50  ;;  %v485_v54 = vmul.f32 %v473_v7, %v454_v51  ;;  %v480_v55 = vmul.f32 %v469_v3, %v447_v6  ;;  %v481_v56 = vmul.f32 %v473_v7, %v453_v52  ;;  %773 = vmatprep.subr.bf16.mxu0 %v487_v48  ;;  %v1301_v3 = vld [vmem:[%s1882_s2 + $0x70] ss:$8 sps:$4 sm:$0xff]  }
  0xe3   :  { %774 = vmatpush1.bf16.msra.mxu0 %v486_v49 }
  0xe4   :  { %v493_v57 = vpop.permute.xlu1 %492  ;;  %v491_v58 = vpop.permute.xlu0 %490  ;;  %v489_v59 = vpack.c.bf16 %v485_v54, %v481_v56  ;;  %v488_v60 = vpack.c.bf16 %v484_v53, %v480_v55 }
  0xe6   :  { %886 = vmatprep.subr.bf16.mxu1 %v489_v59 }
  0xe7   :  { %887 = vmatpush1.bf16.msra.mxu1 %v488_v60 }
  0xe8   :  { %v497_v63 = vpop.permute.xlu1 %496  ;;  %v495_v4 = vpop.permute.xlu0 %494 }
  0xe9   :  { %v512_v5 = vsel %vm506_vm8, %v493_v57, %v497_v63  ;;  %v511_v8 = vsel %vm506_vm8, %v491_v58, %v495_v4 }
  0xea   :  { %v542_v12 = vmul.f32 %v521_v62, %v512_v5  ;;  %v538_v13 = vmul.f32 %v521_v62, %v511_v8 }
  0xec   :  { %v501_v14 = vpop.permute.xlu1 %500  ;;  %v499_v15 = vpop.permute.xlu0 %498  ;;  %v546_v11 = vpack.c.bf16 %v542_v12, %v538_v13 }
  0xed   :  { %v510_v16 = vsel %vm506_vm8, %v497_v63, %v501_v14  ;;  %v509_v24 = vsel %vm506_vm8, %v495_v4, %v499_v15 }
  0xee   :  { %v543_v17 = vmul.f32 %v525_v9, %v510_v16  ;;  %v539_v18 = vmul.f32 %v525_v9, %v509_v24 }
  0xf0   :  { %v505_v22 = vpop.permute.xlu1 %504  ;;  %v503_v23 = vpop.permute.xlu0 %502  ;;  %v547_v26 = vpack.c.bf16 %v543_v17, %v539_v18 }
  0xf1   :  { %v508_v27 = vsel %vm506_vm8, %v501_v14, %v505_v22  ;;  %v514_v28 = vsel %vm506_vm8, %v505_v22, %v493_v57  ;;  %v507_v29 = vsel %vm506_vm8, %v499_v15, %v503_v23  ;;  %v513_v30 = vsel %vm506_vm8, %v503_v23, %v491_v58 }
  0xf2   :  { %v544_v31 = vmul.f32 %v529_v19, %v508_v27  ;;  %v545_v20 = vmul.f32 %v533_v21, %v514_v28  ;;  %v540_v32 = vmul.f32 %v529_v19, %v507_v29  ;;  %v541_v25 = vmul.f32 %v533_v21, %v513_v30  ;;  %775 = vmatprep.subr.bf16.mxu0 %v547_v26 }
  0xf3   :  { %776 = vmatpush1.bf16.msra.mxu0 %v546_v11 }
  0xf4   :  { %v549_v35 = vpack.c.bf16 %v545_v20, %v541_v25  ;;  %v548_v36 = vpack.c.bf16 %v544_v31, %v540_v32 }
  0xf6   :  { %792 = vmatmul.mubr.bf16.vlgmr.msra.gmra.mrb[0].mxu0 %v1278_v33  ;;  %888 = vmatprep.subr.bf16.mxu1 %v549_v35 }
  0xf7   :  { %889 = vmatpush1.bf16.msra.mxu1 %v548_v36  ;;  %1249 = vmatprep.mubr.msk.bf16.mxu0 %vm734_vm0, %v1281_v34 }
  0xfa   :  { %905 = vmatmul.mubr.bf16.vlgmr.msra.gmra.mrb[0].mxu1 %v1278_v33 }
  0xfb   :  { %1257 = vmatprep.mubr.msk.bf16.mxu1 %vm734_vm0, %v1281_v34 }
  0xfe   :  { %802 = vmatmul.mubr.bf16.gmra.mrb[4].mxu0 %v1283_v10 }
  0xff   :  { %1250 = vmatprep.mubr.msk.bf16.mxu0 %vm734_vm0, %v1284_v37 }
 0x102   :  { %915 = vmatmul.mubr.bf16.gmra.mrb[4].mxu1 %v1283_v10 }
 0x103   :  { %1258 = vmatprep.mubr.msk.bf16.mxu1 %vm734_vm0, %v1284_v37 }
 0x106   :  { %812 = vmatmul.mubr.bf16.gmra.mrb[8].mxu0 %v1286_v38 }
 0x107   :  { %1251 = vmatprep.mubr.msk.bf16.mxu0 %vm734_vm0, %v1287_v39 }
 0x10a   :  { %925 = vmatmul.mubr.bf16.gmra.mrb[8].mxu1 %v1286_v38 }
 0x10b   :  { %1259 = vmatprep.mubr.msk.bf16.mxu1 %vm734_vm0, %v1287_v39 }
 0x10e   :  { %822 = vmatmul.mubr.bf16.gmra.mrb[12].mxu0 %v1289_v40 }
 0x10f   :  { %1252 = vmatprep.mubr.msk.bf16.mxu0 %vm734_vm0, %v1290_v41 }
 0x112   :  { %935 = vmatmul.mubr.bf16.gmra.mrb[12].mxu1 %v1289_v40 }
 0x113   :  { %1260 = vmatprep.mubr.msk.bf16.mxu1 %vm734_vm0, %v1290_v41 }
 0x116   :  { %832 = vmatmul.mubr.bf16.gmra.mrb[16].mxu0 %v1292_v42 }
 0x117   :  { %1253 = vmatprep.mubr.msk.bf16.mxu0 %vm734_vm0, %v1293_v0 }
 0x11a   :  { %945 = vmatmul.mubr.bf16.gmra.mrb[16].mxu1 %v1292_v42 }
 0x11b   :  { %1261 = vmatprep.mubr.msk.bf16.mxu1 %vm734_vm0, %v1293_v0 }
 0x11e   :  { %842 = vmatmul.mubr.bf16.gmra.mrb[20].mxu0 %v1295_v1 }
 0x11f   :  { %1254 = vmatprep.mubr.msk.bf16.mxu0 %vm734_vm0, %v1296_v2 }
 0x122   :  { %955 = vmatmul.mubr.bf16.gmra.mrb[20].mxu1 %v1295_v1 }
 0x123   :  { %1262 = vmatprep.mubr.msk.bf16.mxu1 %vm734_vm0, %v1296_v2 }
 0x124   :  { %v585_v7 = vpop.permute.xlu0 %584  ;;  %v590_v46 = vpop.permute.xlu1 %589 }
 0x126   :  { %852 = vmatmul.mubr.bf16.gmra.mrb[24].mxu0 %v1298_v44 }
 0x127   :  { %1255 = vmatprep.mubr.msk.bf16.mxu0 %vm734_vm0, %v1299_v45 }
 0x128   :  { %v595_v5 = vpop.permute.xlu1 %594  ;;  %v600_v24 = vpop.permute.xlu0 %599 }
 0x12a   :  { %965 = vmatmul.mubr.bf16.gmra.mrb[24].mxu1 %v1298_v44 }
 0x12b   :  { %1263 = vmatprep.mubr.msk.bf16.mxu1 %vm734_vm0, %v1299_v45 }
 0x12c   :  { %v610_v2 = vpop.permute.xlu0 %609 }
 0x12e   :  { %862 = vmatmul.mubr.bf16.gmra.mrb[28].mxu0 %v1301_v3 }
 0x12f   :  { %1133 = vmatprep.mubr.bf16.mxu0 %v1343_v43 }
 0x131   :  { %v605_v37 = vpop.permute.xlu1 %604 }
 0x132   :  { %975 = vmatmul.mubr.bf16.gmra.mrb[28].mxu1 %v1301_v3 }
 0x133   :  { %1176 = vmatprep.mubr.bf16.mxu1 %v1343_v43 }
 0x1c9   :  { %v793_v47 = vpop.f32.mrb[0].mxu0 }
 0x1ca   :  { %v794_v48 = vadd.f32 %v793_v47, %v585_v7  ;;  %v795_v49 = vpop.f32.mrb[1].mxu0 }
 0x1cb   :  { %v796_v50 = vadd.f32 %v795_v49, %v585_v7  ;;  %v797_v51 = vpop.f32.mrb[2].mxu0 }
 0x1cc   :  { %v985_v6 = vmax.f32 %v794_v48, 0.0  ;;  %v798_v52 = vadd.f32 %v797_v51, %v590_v46  ;;  %v799_v53 = vpop.f32.mrb[3].mxu0 }
 0x1cd   :  { %v986_v54 = vmax.f32 %v796_v50, 0.0  ;;  %v800_v55 = vadd.f32 %v799_v53, %v590_v46  ;;  %v906_v56 = vpop.f32.mrb[0].mxu1 }
 0x1ce   :  { %v989_v57 = vmax.f32 %v798_v52, 0.0  ;;  %v907_v58 = vadd.f32 %v906_v56, %v585_v7  ;;  %v908_v59 = vpop.f32.mrb[1].mxu1 }
 0x1cf   :  { %v990_v60 = vmax.f32 %v800_v55, 0.0  ;;  %v909_v61 = vadd.f32 %v908_v59, %v585_v7  ;;  %v910_v62 = vpop.f32.mrb[2].mxu1 }
 0x1d0   :  { %v1051_v43 = vpack.c.bf16 %v989_v57, %v985_v6  ;;  %v911_v63 = vadd.f32 %v910_v62, %v590_v46  ;;  %v912_v4 = vpop.f32.mrb[3].mxu1  ;;  %v987_v13 = vmax.f32 %v907_v58, 0.0  ;;  %v615_v62 = vpop.permute.xlu1 %614 }
 0x1d1   :  { %v1052_v8 = vpack.c.bf16 %v990_v60, %v986_v54  ;;  %v913_v9 = vadd.f32 %v912_v4, %v590_v46  ;;  %v803_v12 = vpop.f32.mrb[4].mxu0  ;;  %v988_v17 = vmax.f32 %v909_v61, 0.0 }
 0x1d2   :  { %v991_v14 = vmax.f32 %v911_v63, 0.0  ;;  %v804_v15 = vadd.f32 %v803_v12, %v595_v5  ;;  %v805_v16 = vpop.f32.mrb[5].mxu0 }
 0x1d3   :  { %v992_v18 = vmax.f32 %v913_v9, 0.0  ;;  %v806_v19 = vadd.f32 %v805_v16, %v595_v5  ;;  %v807_v21 = vpop.f32.mrb[6].mxu0  ;;  %1101 = vmatprep.subr.bf16.mxu0 %v1052_v8 }
 0x1d4   :  { %v1053_v22 = vpack.c.bf16 %v991_v14, %v987_v13  ;;  %v993_v23 = vmax.f32 %v804_v15, 0.0  ;;  %v808_v26 = vadd.f32 %v807_v21, %v600_v24  ;;  %v809_v11 = vpop.f32.mrb[7].mxu0  ;;  %1102 = vmatpush1.bf16.msra.mxu0 %v1051_v43  ;;  %v620_v13 = vpop.permute.xlu0 %619 }
 0x1d5   :  { %v1054_v27 = vpack.c.bf16 %v992_v18, %v988_v17  ;;  %v994_v28 = vmax.f32 %v806_v19, 0.0  ;;  %v810_v29 = vadd.f32 %v809_v11, %v600_v24  ;;  %v916_v30 = vpop.f32.mrb[4].mxu1 }
 0x1d6   :  { %v997_v31 = vmax.f32 %v808_v26, 0.0  ;;  %v917_v20 = vadd.f32 %v916_v30, %v595_v5  ;;  %v918_v32 = vpop.f32.mrb[5].mxu1 }
 0x1d7   :  { %v998_v25 = vmax.f32 %v810_v29, 0.0  ;;  %v919_v33 = vadd.f32 %v918_v32, %v595_v5  ;;  %v920_v34 = vpop.f32.mrb[6].mxu1  ;;  %1144 = vmatprep.subr.bf16.mxu1 %v1054_v27 }
 0x1d8   :  { %v1055_v35 = vpack.c.bf16 %v997_v31, %v993_v23  ;;  %v921_v36 = vadd.f32 %v920_v34, %v600_v24  ;;  %v922_v10 = vpop.f32.mrb[7].mxu1  ;;  %1145 = vmatpush1.bf16.msra.mxu1 %v1053_v22  ;;  %v995_v41 = vmax.f32 %v917_v20, 0.0  ;;  %v625_v34 = vpop.permute.xlu1 %624 }
 0x1d9   :  { %v1056_v38 = vpack.c.bf16 %v998_v25, %v994_v28  ;;  %v923_v39 = vadd.f32 %v922_v10, %v600_v24  ;;  %v813_v40 = vpop.f32.mrb[8].mxu0  ;;  %v996_v44 = vmax.f32 %v919_v33, 0.0 }
 0x1da   :  { %v999_v42 = vmax.f32 %v921_v36, 0.0  ;;  %v814_v0 = vadd.f32 %v813_v40, %v605_v37  ;;  %v815_v1 = vpop.f32.mrb[9].mxu0 }
 0x1db   :  { %v1000_v45 = vmax.f32 %v923_v39, 0.0  ;;  %v816_v3 = vadd.f32 %v815_v1, %v605_v37  ;;  %v817_v7 = vpop.f32.mrb[10].mxu0  ;;  %1103 = vmatprep.subr.bf16.mxu0 %v1056_v38 }
 0x1dc   :  { %v1057_v46 = vpack.c.bf16 %v999_v42, %v995_v41  ;;  %v1001_v47 = vmax.f32 %v814_v0, 0.0  ;;  %v818_v48 = vadd.f32 %v817_v7, %v610_v2  ;;  %v819_v49 = vpop.f32.mrb[11].mxu0  ;;  %1104 = vmatpush1.bf16.msra.mxu0 %v1055_v35  ;;  %v630_v41 = vpop.permute.xlu0 %629 }
 0x1dd   :  { %v1058_v50 = vpack.c.bf16 %v1000_v45, %v996_v44  ;;  %v1002_v51 = vmax.f32 %v816_v3, 0.0  ;;  %v820_v6 = vadd.f32 %v819_v49, %v610_v2  ;;  %v926_v52 = vpop.f32.mrb[8].mxu1 }
 0x1de   :  { %v1005_v53 = vmax.f32 %v818_v48, 0.0  ;;  %v927_v54 = vadd.f32 %v926_v52, %v605_v37  ;;  %v928_v55 = vpop.f32.mrb[9].mxu1 }
 0x1df   :  { %v1006_v56 = vmax.f32 %v820_v6, 0.0  ;;  %v929_v57 = vadd.f32 %v928_v55, %v605_v37  ;;  %v930_v58 = vpop.f32.mrb[10].mxu1  ;;  %1146 = vmatprep.subr.bf16.mxu1 %v1058_v50 }
 0x1e0   :  { %v1059_v59 = vpack.c.bf16 %v1005_v53, %v1001_v47  ;;  %v931_v60 = vadd.f32 %v930_v58, %v610_v2  ;;  %v932_v61 = vpop.f32.mrb[11].mxu1  ;;  %1147 = vmatpush1.bf16.msra.mxu1 %v1057_v46  ;;  %v1003_v5 = vmax.f32 %v927_v54, 0.0  ;;  %v635_v58 = vpop.permute.xlu1 %634 }
 0x1e1   :  { %v1060_v43 = vpack.c.bf16 %v1006_v56, %v1002_v51  ;;  %v933_v63 = vadd.f32 %v932_v61, %v610_v2  ;;  %v823_v4 = vpop.f32.mrb[12].mxu0  ;;  %v1004_v14 = vmax.f32 %v929_v57, 0.0 }
 0x1e2   :  { %v1007_v8 = vmax.f32 %v931_v60, 0.0  ;;  %v824_v9 = vadd.f32 %v823_v4, %v615_v62  ;;  %v825_v12 = vpop.f32.mrb[13].mxu0 }
 0x1e3   :  { %v1008_v15 = vmax.f32 %v933_v63, 0.0  ;;  %v826_v16 = vadd.f32 %v825_v12, %v615_v62  ;;  %v827_v24 = vpop.f32.mrb[14].mxu0  ;;  %1105 = vmatprep.subr.bf16.mxu0 %v1060_v43 }
 0x1e4   :  { %v1061_v17 = vpack.c.bf16 %v1007_v8, %v1003_v5  ;;  %v1009_v18 = vmax.f32 %v824_v9, 0.0  ;;  %v828_v19 = vadd.f32 %v827_v24, %v620_v13  ;;  %v829_v21 = vpop.f32.mrb[15].mxu0  ;;  %1106 = vmatpush1.bf16.msra.mxu0 %v1059_v59  ;;  %v640_v5 = vpop.permute.xlu0 %639 }
 0x1e5   :  { %v1062_v22 = vpack.c.bf16 %v1008_v15, %v1004_v14  ;;  %v1010_v23 = vmax.f32 %v826_v16, 0.0  ;;  %v830_v26 = vadd.f32 %v829_v21, %v620_v13  ;;  %v936_v11 = vpop.f32.mrb[12].mxu1 }
 0x1e6   :  { %v1013_v27 = vmax.f32 %v828_v19, 0.0  ;;  %v937_v28 = vadd.f32 %v936_v11, %v615_v62  ;;  %v938_v29 = vpop.f32.mrb[13].mxu1 }
 0x1e7   :  { %v1014_v30 = vmax.f32 %v830_v26, 0.0  ;;  %v939_v31 = vadd.f32 %v938_v29, %v615_v62  ;;  %v940_v20 = vpop.f32.mrb[14].mxu1  ;;  %1148 = vmatprep.subr.bf16.mxu1 %v1062_v22 }
 0x1e8   :  { %v1063_v32 = vpack.c.bf16 %v1013_v27, %v1009_v18  ;;  %v941_v25 = vadd.f32 %v940_v20, %v620_v13  ;;  %v942_v33 = vpop.f32.mrb[15].mxu1  ;;  %1149 = vmatpush1.bf16.msra.mxu1 %v1061_v17  ;;  %v1011_v37 = vmax.f32 %v937_v28, 0.0  ;;  %v645_v20 = vpop.permute.xlu1 %644 }
 0x1e9   :  { %v1064_v35 = vpack.c.bf16 %v1014_v30, %v1010_v23  ;;  %v943_v36 = vadd.f32 %v942_v33, %v620_v13  ;;  %v833_v10 = vpop.f32.mrb[16].mxu0  ;;  %v1012_v42 = vmax.f32 %v939_v31, 0.0 }
 0x1ea   :  { %v1015_v38 = vmax.f32 %v941_v25, 0.0  ;;  %v834_v39 = vadd.f32 %v833_v10, %v625_v34  ;;  %v835_v40 = vpop.f32.mrb[17].mxu0 }
 0x1eb   :  { %v1016_v0 = vmax.f32 %v943_v36, 0.0  ;;  %v836_v1 = vadd.f32 %v835_v40, %v625_v34  ;;  %v837_v2 = vpop.f32.mrb[18].mxu0  ;;  %1107 = vmatprep.subr.bf16.mxu0 %v1064_v35 }
 0x1ec   :  { %v1065_v44 = vpack.c.bf16 %v1015_v38, %v1011_v37  ;;  %v1017_v45 = vmax.f32 %v834_v39, 0.0  ;;  %v838_v3 = vadd.f32 %v837_v2, %v630_v41  ;;  %v839_v7 = vpop.f32.mrb[19].mxu0  ;;  %1108 = vmatpush1.bf16.msra.mxu0 %v1063_v32  ;;  %v650_v37 = vpop.permute.xlu0 %649 }
 0x1ed   :  { %v1066_v46 = vpack.c.bf16 %v1016_v0, %v1012_v42  ;;  %v1018_v47 = vmax.f32 %v836_v1, 0.0  ;;  %v840_v48 = vadd.f32 %v839_v7, %v630_v41  ;;  %v946_v49 = vpop.f32.mrb[16].mxu1 }
 0x1ee   :  { %v1021_v50 = vmax.f32 %v838_v3, 0.0  ;;  %v947_v51 = vadd.f32 %v946_v49, %v625_v34  ;;  %v948_v6 = vpop.f32.mrb[17].mxu1 }
 0x1ef   :  { %v1022_v52 = vmax.f32 %v840_v48, 0.0  ;;  %v949_v53 = vadd.f32 %v948_v6, %v625_v34  ;;  %v950_v54 = vpop.f32.mrb[18].mxu1  ;;  %1150 = vmatprep.subr.bf16.mxu1 %v1066_v46 }
 0x1f0   :  { %v1067_v55 = vpack.c.bf16 %v1021_v50, %v1017_v45  ;;  %v951_v56 = vadd.f32 %v950_v54, %v630_v41  ;;  %v952_v57 = vpop.f32.mrb[19].mxu1  ;;  %1151 = vmatpush1.bf16.msra.mxu1 %v1065_v44  ;;  %v1019_v62 = vmax.f32 %v947_v51, 0.0  ;;  %v655_v54 = vpop.permute.xlu1 %654 }
 0x1f1   :  { %v1068_v59 = vpack.c.bf16 %v1022_v52, %v1018_v47  ;;  %v953_v60 = vadd.f32 %v952_v57, %v630_v41  ;;  %v843_v61 = vpop.f32.mrb[20].mxu0  ;;  %v1020_v8 = vmax.f32 %v949_v53, 0.0 }
 0x1f2   :  { %v1023_v43 = vmax.f32 %v951_v56, 0.0  ;;  %v844_v63 = vadd.f32 %v843_v61, %v635_v58  ;;  %v845_v4 = vpop.f32.mrb[21].mxu0 }
 0x1f3   :  { %v1024_v9 = vmax.f32 %v953_v60, 0.0  ;;  %v846_v12 = vadd.f32 %v845_v4, %v635_v58  ;;  %v847_v13 = vpop.f32.mrb[22].mxu0  ;;  %1109 = vmatprep.subr.bf16.mxu0 %v1068_v59 }
 0x1f4   :  { %v1069_v14 = vpack.c.bf16 %v1023_v43, %v1019_v62  ;;  %v848_v15 = vadd.f32 %v847_v13, %v640_v5  ;;  %v849_v16 = vpop.f32.mrb[23].mxu0  ;;  %1110 = vmatpush1.bf16.msra.mxu0 %v1067_v55  ;;  %v1025_v19 = vmax.f32 %v844_v63, 0.0  ;;  %v660_v62 = vpop.permute.xlu0 %659 }
 0x1f5   :  { %v1070_v24 = vpack.c.bf16 %v1024_v9, %v1020_v8  ;;  %v850_v17 = vadd.f32 %v849_v16, %v640_v5  ;;  %v956_v18 = vpop.f32.mrb[20].mxu1  ;;  %v1026_v26 = vmax.f32 %v846_v12, 0.0 }
 0x1f6   :  { %v1029_v21 = vmax.f32 %v848_v15, 0.0  ;;  %v957_v22 = vadd.f32 %v956_v18, %v635_v58  ;;  %v958_v23 = vpop.f32.mrb[21].mxu1 }
 0x1f7   :  { %v1030_v11 = vmax.f32 %v850_v17, 0.0  ;;  %v959_v27 = vadd.f32 %v958_v23, %v635_v58  ;;  %v960_v28 = vpop.f32.mrb[22].mxu1  ;;  %1152 = vmatprep.subr.bf16.mxu1 %v1070_v24 }
 0x1f8   :  { %v1071_v29 = vpack.c.bf16 %v1029_v21, %v1025_v19  ;;  %v961_v30 = vadd.f32 %v960_v28, %v640_v5  ;;  %v962_v31 = vpop.f32.mrb[23].mxu1  ;;  %1153 = vmatpush1.bf16.msra.mxu1 %v1069_v14  ;;  %v1027_v34 = vmax.f32 %v957_v22, 0.0 }
 0x1f9   :  { %v1072_v32 = vpack.c.bf16 %v1030_v11, %v1026_v26  ;;  %v963_v25 = vadd.f32 %v962_v31, %v640_v5  ;;  %v853_v33 = vpop.f32.mrb[24].mxu0  ;;  %v1028_v38 = vmax.f32 %v959_v27, 0.0 }
 0x1fa   :  { %v1031_v35 = vmax.f32 %v961_v30, 0.0  ;;  %v854_v36 = vadd.f32 %v853_v33, %v645_v20  ;;  %v855_v10 = vpop.f32.mrb[25].mxu0 }
 0x1fb   :  { %v1032_v39 = vmax.f32 %v963_v25, 0.0  ;;  %v856_v40 = vadd.f32 %v855_v10, %v645_v20  ;;  %v857_v41 = vpop.f32.mrb[26].mxu0  ;;  %1111 = vmatprep.subr.bf16.mxu0 %v1072_v32  ;;  %v1302_v25 = vld [vmem:[%s1884_s4] sm:$0xff]  }
 0x1fc   :  { %v1073_v42 = vpack.c.bf16 %v1031_v35, %v1027_v34  ;;  %v858_v0 = vadd.f32 %v857_v41, %v650_v37  ;;  %v859_v1 = vpop.f32.mrb[27].mxu0  ;;  %1112 = vmatpush1.bf16.msra.mxu0 %v1071_v29  ;;  %v1033_v3 = vmax.f32 %v854_v36, 0.0  ;;  %v1088_v35 = vpop.permute.xlu1 %1087  ;;  %v1303_v41 = vld [vmem:[%s1880_s0] sm:$0xff] }
 0x1fd   :  { %v1074_v2 = vpack.c.bf16 %v1032_v39, %v1028_v38  ;;  %v860_v44 = vadd.f32 %v859_v1, %v650_v37  ;;  %v966_v45 = vpop.f32.mrb[24].mxu1  ;;  %v1034_v48 = vmax.f32 %v856_v40, 0.0  ;;  %v1093_v38 = vpop.permute.xlu0 %1092 }
 0x1fe   :  { %v1037_v7 = vmax.f32 %v858_v0, 0.0  ;;  %v967_v46 = vadd.f32 %v966_v45, %v645_v20  ;;  %v968_v47 = vpop.f32.mrb[25].mxu1 }
 0x1ff   :  { %v1038_v49 = vmax.f32 %v860_v44, 0.0  ;;  %v969_v50 = vadd.f32 %v968_v47, %v645_v20  ;;  %v970_v51 = vpop.f32.mrb[26].mxu1  ;;  %1154 = vmatprep.subr.bf16.mxu1 %v1074_v2  ;;  %v1304_v2 = vld [vmem:[%s1880_s0 + $0x8] sm:$0xff] }
 0x200   :  { %v1075_v6 = vpack.c.bf16 %v1037_v7, %v1033_v3  ;;  %v971_v52 = vadd.f32 %v970_v51, %v650_v37  ;;  %v972_v53 = vpop.f32.mrb[27].mxu1  ;;  %1155 = vmatpush1.bf16.msra.mxu1 %v1073_v42  ;;  %v1035_v58 = vmax.f32 %v967_v46, 0.0  ;;  %v1305_v7 = vld [vmem:[%s1880_s0 + $0x10] sm:$0xff] }
 0x201   :  { %v1076_v55 = vpack.c.bf16 %v1038_v49, %v1034_v48  ;;  %v973_v56 = vadd.f32 %v972_v53, %v650_v37  ;;  %v863_v57 = vpop.f32.mrb[28].mxu0  ;;  %v1036_v43 = vmax.f32 %v969_v50, 0.0  ;;  %v1306_v49 = vld [vmem:[%s1880_s0 + $0x18] sm:$0xff] }
 0x202   :  { %v1039_v59 = vmax.f32 %v971_v52, 0.0  ;;  %v864_v60 = vadd.f32 %v863_v57, %v655_v54  ;;  %v865_v61 = vpop.f32.mrb[29].mxu0  ;;  %v1307_v52 = vld [vmem:[%s1880_s0 + $0x20] sm:$0xff] }
 0x203   :  { %v1040_v63 = vmax.f32 %v973_v56, 0.0  ;;  %v866_v4 = vadd.f32 %v865_v61, %v655_v54  ;;  %v867_v5 = vpop.f32.mrb[30].mxu0  ;;  %1113 = vmatprep.subr.bf16.mxu0 %v1076_v55  ;;  %v1308_v56 = vld [vmem:[%s1880_s0 + $0x28] sm:$0xff]  ;;  %v1310_v61 = vld [vmem:[%s1880_s0 + $0x38] sm:$0xff] }
 0x204   :  { %v1077_v8 = vpack.c.bf16 %v1039_v59, %v1035_v58  ;;  %v868_v9 = vadd.f32 %v867_v5, %v660_v62  ;;  %v869_v12 = vpop.f32.mrb[31].mxu0  ;;  %1114 = vmatpush1.bf16.msra.mxu0 %v1075_v6  ;;  %v1041_v16 = vmax.f32 %v864_v60, 0.0  ;;  %v1309_v59 = vld [vmem:[%s1880_s0 + $0x30] sm:$0xff] }
 0x205   :  { %v1078_v13 = vpack.c.bf16 %v1040_v63, %v1036_v43  ;;  %v870_v14 = vadd.f32 %v869_v12, %v660_v62  ;;  %v976_v15 = vpop.f32.mrb[28].mxu1  ;;  %v1042_v19 = vmax.f32 %v866_v4, 0.0 }
 0x206   :  { %v1045_v24 = vmax.f32 %v868_v9, 0.0  ;;  %v977_v17 = vadd.f32 %v976_v15, %v655_v54  ;;  %v978_v18 = vpop.f32.mrb[29].mxu1 }
 0x207   :  { %v1046_v21 = vmax.f32 %v870_v14, 0.0  ;;  %v979_v22 = vadd.f32 %v978_v18, %v655_v54  ;;  %v980_v23 = vpop.f32.mrb[30].mxu1  ;;  %1156 = vmatprep.subr.bf16.mxu1 %v1078_v13 }
 0x208   :  { %v1079_v26 = vpack.c.bf16 %v1045_v24, %v1041_v16  ;;  %v981_v11 = vadd.f32 %v980_v23, %v660_v62  ;;  %v982_v27 = vpop.f32.mrb[31].mxu1  ;;  %1157 = vmatpush1.bf16.msra.mxu1 %v1077_v8  ;;  %v1043_v30 = vmax.f32 %v977_v17, 0.0 }
 0x209   :  { %v1080_v28 = vpack.c.bf16 %v1046_v21, %v1042_v19  ;;  %v983_v29 = vadd.f32 %v982_v27, %v660_v62  ;;  %v1044_v20 = vmax.f32 %v979_v22, 0.0 }
 0x20a   :  { %v1047_v31 = vmax.f32 %v981_v11, 0.0 }
 0x20b   :  { %v1048_v32 = vmax.f32 %v983_v29, 0.0  ;;  %1115 = vmatprep.subr.bf16.mxu0 %v1080_v28 }
 0x20c   :  { %v1081_v33 = vpack.c.bf16 %v1047_v31, %v1043_v30  ;;  %1116 = vmatpush1.bf16.msra.mxu0 %v1079_v26 }
 0x20d   :  { %v1082_v34 = vpack.c.bf16 %v1048_v32, %v1044_v20 }
 0x20f   :  { %1134 = vmatmul.mubr.bf16.vlgmr.msra.gmra.mrb[32].mxu0 %v1302_v25  ;;  %1158 = vmatprep.subr.bf16.mxu1 %v1082_v34 }
 0x210   :  { %1159 = vmatpush1.bf16.msra.mxu1 %v1081_v33 }
 0x213   :  { %1177 = vmatmul.mubr.bf16.vlgmr.msra.gmra.mrb[32].mxu1 %v1302_v25 }
 0x2e2   :  { %v1135_v36 = vpop.f32.mrb[32].mxu0 }
 0x2e3   :  { %v1136_v10 = vadd.f32 %v1135_v36, %v1088_v35  ;;  %v1137_v37 = vpop.f32.mrb[33].mxu0 }
 0x2e4   :  { %v1138_v39 = vadd.f32 %v1137_v37, %v1088_v35  ;;  %v1139_v40 = vpop.f32.mrb[34].mxu0 }
 0x2e5   :  { %v1187_v42 = vadd.f32 %v1303_v41, %v1136_v10  ;;  %v1140_v0 = vadd.f32 %v1139_v40, %v1093_v38  ;;  %v1141_v1 = vpop.f32.mrb[35].mxu0 }
 0x2e6   :  { %v1188_v44 = vadd.f32 %v1304_v2, %v1138_v39  ;;  %v1142_v45 = vadd.f32 %v1141_v1, %v1093_v38  ;;  %v1178_v3 = vpop.f32.mrb[32].mxu1 }
 0x2e7   :  { %1195 = vst [vmem:[#allocation2] sm:$0xff] %v1187_v42  ;;  %v1191_v46 = vadd.f32 %v1305_v7, %v1140_v0  ;;  %v1179_v47 = vadd.f32 %v1178_v3, %v1088_v35  ;;  %v1180_v48 = vpop.f32.mrb[33].mxu1 }
 0x2e8   :  { %1196 = vst [vmem:[#allocation2 + $0x8] sm:$0xff] %v1188_v44  ;;  %v1192_v50 = vadd.f32 %v1306_v49, %v1142_v45  ;;  %v1181_v51 = vadd.f32 %v1180_v48, %v1088_v35  ;;  %v1182_v6 = vpop.f32.mrb[34].mxu1 }
 0x2e9   :  { %1197 = vst [vmem:[#allocation2 + $0x10] sm:$0xff] %v1191_v46  ;;  %v1189_v53 = vadd.f32 %v1307_v52, %v1179_v47  ;;  %v1183_v54 = vadd.f32 %v1182_v6, %v1093_v38  ;;  %v1184_v55 = vpop.f32.mrb[35].mxu1 }
 0x2ea   :  { %1198 = vst [vmem:[#allocation2 + $0x18] sm:$0xff] %v1192_v50  ;;  %v1190_v57 = vadd.f32 %v1308_v56, %v1181_v51  ;;  %v1185_v58 = vadd.f32 %v1184_v55, %v1093_v38 }
 0x2eb   :  { %1200 = vst [vmem:[#allocation2 + $0x20] sm:$0xff] %v1189_v53  ;;  %v1193_v60 = vadd.f32 %v1309_v59, %v1183_v54 }
 0x2ec   :  { %1201 = vst [vmem:[#allocation2 + $0x28] sm:$0xff] %v1190_v57  ;;  %v1194_v62 = vadd.f32 %v1310_v61, %v1185_v58 }
 0x2ed   :  { %1202 = vst [vmem:[#allocation2 + $0x30] sm:$0xff] %v1193_v60 }
 0x2ee   :  { %1203 = vst [vmem:[#allocation2 + $0x38] sm:$0xff] %v1194_v62 }
 0x2ef   :  { %1322 = shalt.err (!%p1319_p4)
}
 0x2f0   :  { %s1323_s28 = scalar_lea.hbm %s1886_s6, 1024 }
 0x2f1   :  { %p1324_p5 = scmp.ne.s32.totalorder %s1886_s6, %s1323_s28  ;;  %p1327_p6 = scmp.lt.u32.totalorder %s1323_s28, %s1886_s6 }
 0x2f3   :  { %p1329_p7 = pnand %p1327_p6, %p1324_p5 }
 0x2f5   :  { %1332 = shalt.err (!%p1329_p7)
}
 0x2f6   :  { %s1345_s7 = smov 256  }
 0x2f7   :  { %1215 = dma.vmem_to_hbm [thread:$0]  %s1210_s20, 1024, %s1886_s6, [#allocation3], %s1345_s7, %s1345_s7, %s1336_s14  }
 0x2f8   :  { %1333 = dma.done.wait [#allocation3], 1024  }
 0x2f9   :  { %1334 = vsyncadd [#allocation3], 4294966272 }
 0x2fa   :  { %1219 = vsyncpa [#allocation3], 1 }

</bundles_post_ra>
